<compile_context>
chip_gen: v6e
topology: v6e:2x2x1
jax: 0.10.0
libtpu: 0.0.40
codegen_flags: <defaults>
</compile_context>

<pallas_src>
import functools

import jax
import jax.numpy as jnp
from jax import lax
from jax.experimental import pallas as pl
from jax.experimental.pallas import tpu as pltpu

_NEG_SLOPE = 0.2
_BN_EPS = 1e-5

_VMEM_BUDGET = 24 * 1024 * 1024       # target bytes of double-buffered blocks
_VMEM_LIMIT_BYTES = 32 * 1024 * 1024  # >= v5e's 16 MiB default, == v6e/v7x scope
_W_RESIDENT_MAX = 4 * 1024 * 1024     # bf16 weight slab residency cap (v5e-safe)
_TILE_M_CAP = 2048


def _round_up(x, m):
    return (x + m - 1) // m * m


# ----------------------------------------------------------------------------
# Kernel A: single-K-tile conv matmul (weights fully resident in VMEM).
#           Emits per-M-tile BN partial stats; optional fused bias + LeakyReLU.
# ----------------------------------------------------------------------------
def _conv_kernel_single(p_ref, w_ref, b_ref, y_ref, st_ref, *, fuse, use_act,
                        neg_slope):
    acc = jnp.dot(p_ref[...], w_ref[...], preferred_element_type=jnp.float32)
    # Partial stats of the raw conv output (pre-epilogue).  Zero padding rows /
    # channels contribute exactly zero.
    st_ref[...] = jnp.concatenate(
        [jnp.sum(acc, axis=0, keepdims=True),
         jnp.sum(acc * acc, axis=0, keepdims=True)], axis=0)[None]
    if fuse:                                  # bias (+ LeakyReLU) epilogue
        acc = acc + b_ref[...]
        if use_act:
            acc = jnp.where(acc >= 0.0, acc, neg_slope * acc)
    y_ref[...] = acc.astype(y_ref.dtype)


# ----------------------------------------------------------------------------
# Kernel B: multi-K-tile conv matmul.  Accumulates directly into the resident
#           f32 output block (no VMEM scratch); stats + epilogue at finalize.
# ----------------------------------------------------------------------------
def _conv_kernel_multik(p_ref, w_ref, b_ref, y_ref, st_ref, *, fuse, use_act,
                        neg_slope):
    k = pl.program_id(1)

    @pl.when(k == 0)
    def _init():
        y_ref[...] = jnp.zeros_like(y_ref)

    y_ref[...] += jnp.dot(p_ref[...], w_ref[...],
                          preferred_element_type=jnp.float32)

    @pl.when(k == pl.num_programs(1) - 1)
    def _finalize():
        acc = y_ref[...]
        st_ref[...] = jnp.concatenate(
            [jnp.sum(acc, axis=0, keepdims=True),
             jnp.sum(acc * acc, axis=0, keepdims=True)], axis=0)[None]
        if fuse:
            acc = acc + b_ref[...]
            if use_act:
                acc = jnp.where(acc >= 0.0, acc, neg_slope * acc)
            y_ref[...] = acc


def _conv_call(p, w, b, *, tile_m, tile_k, out_dtype, fuse, use_act):
    M_pad, K_pad = p.shape
    N_pad = w.shape[1]
    m_tiles = M_pad // tile_m
    k_tiles = K_pad // tile_k

    out_shape = (jax.ShapeDtypeStruct((M_pad, N_pad), out_dtype),
                 jax.ShapeDtypeStruct((m_tiles, 2, N_pad), jnp.float32))

    if k_tiles == 1:
        kernel = functools.partial(_conv_kernel_single, fuse=fuse,
                                   use_act=use_act, neg_slope=_NEG_SLOPE)
        grid = (m_tiles,)
        in_specs = [
            pl.BlockSpec((tile_m, K_pad), lambda i: (i, 0)),    # patches
            pl.BlockSpec((K_pad, N_pad), lambda i: (0, 0)),     # resident weights
            pl.BlockSpec((1, N_pad), lambda i: (0, 0)),         # bias row
        ]
        out_specs = (pl.BlockSpec((tile_m, N_pad), lambda i: (i, 0)),
                     pl.BlockSpec((1, 2, N_pad), lambda i: (i, 0, 0)))
        dims = ("parallel",)
    else:
        kernel = functools.partial(_conv_kernel_multik, fuse=fuse,
                                   use_act=use_act, neg_slope=_NEG_SLOPE)
        grid = (m_tiles, k_tiles)
        in_specs = [
            pl.BlockSpec((tile_m, tile_k), lambda i, k: (i, k)),
            pl.BlockSpec((tile_k, N_pad), lambda i, k: (k, 0)),
            pl.BlockSpec((1, N_pad), lambda i, k: (0, 0)),
        ]
        out_specs = (pl.BlockSpec((tile_m, N_pad), lambda i, k: (i, 0)),
                     pl.BlockSpec((1, 2, N_pad), lambda i, k: (i, 0, 0)))
        dims = ("parallel", "arbitrary")

    return pl.pallas_call(
        kernel,
        out_shape=out_shape,
        grid=grid,
        in_specs=in_specs,
        out_specs=out_specs,
        compiler_params=pltpu.CompilerParams(
            dimension_semantics=dims,
            vmem_limit_bytes=_VMEM_LIMIT_BYTES),
    )(p, w, b)


# ----------------------------------------------------------------------------
# Tile sizing from a VMEM byte budget.
# ----------------------------------------------------------------------------
def _choose_tile_m(M, tile_k, N_pad, out_itemsize):
    per_row = 2 * (tile_k * 2 + N_pad * out_itemsize)   # dbl-buffered p + y rows
    w_bytes = 2 * tile_k * N_pad * 2                     # dbl-buffered weight slab
    budget = max(_VMEM_BUDGET - w_bytes, 2 * 1024 * 1024)
    tile_m = int(budget // per_row)
    tile_m = max(16, (tile_m // 16) * 16)                # bf16 sublane granularity
    tile_m = min(tile_m, _TILE_M_CAP)
    M16 = _round_up(M, 16)
    if tile_m >= M16:
        if M16 >= 64:
            # Split into (at least) 2 M tiles so the parallel axis can shard
            # across v7x's two TensorCores.
            tile_m = _round_up((M16 + 1) // 2, 16)
        else:
            tile_m = M16
    M_pad = _round_up(M16, tile_m)
    return tile_m, M_pad


# ----------------------------------------------------------------------------
# JAX glue: im2col, pending-BN fold, per-layer driver.
# ----------------------------------------------------------------------------
def _im2col_nhwc(x, kh, kw, stride, pad):
    """x: (N, H, W, C) -> (N*Ho*Wo, kh*kw*C), plus (N, Ho, Wo)."""
    N, H, W, C = x.shape
    xp = jnp.pad(x, ((0, 0), (pad, pad), (pad, pad), (0, 0)))
    Ho = (H + 2 * pad - kh) // stride + 1
    Wo = (W + 2 * pad - kw) // stride + 1
    cols = []
    for i in range(kh):
        for j in range(kw):
            sl = xp[:, i:i + stride * (Ho - 1) + 1:stride,
                    j:j + stride * (Wo - 1) + 1:stride, :]
            cols.append(sl)
    patches = jnp.concatenate(cols, axis=-1)          # (N, Ho, Wo, kh*kw*C)
    return patches.reshape(N * Ho * Wo, kh * kw * C), (N, Ho, Wo)


def _layer_forward(x_nhwc, pending, P):
    # Fold the previous BN layer's scale/shift + LeakyReLU into this layer's
    # glue (XLA fuses it into the bf16 cast / im2col pads) -- no extra pass.
    if pending is not None:
        sc, sh, act = pending
        x_nhwc = x_nhwc * sc + sh
        if act:
            x_nhwc = jnp.where(x_nhwc >= 0.0, x_nhwc, _NEG_SLOPE * x_nhwc)

    x_bf16 = x_nhwc.astype(jnp.bfloat16)
    patches, (N, Ho, Wo) = _im2col_nhwc(x_bf16, P["kh"], P["kw"],
                                        P["stride"], P["pad"])
    M, K = patches.shape
    K_pad, N_pad, tile_k, Cout = P["K_pad"], P["N_pad"], P["tile_k"], P["Cout"]
    k_tiles = K_pad // tile_k
    fuse = not P["use_bn"]

    # bf16 intermediate outputs for fused (non-BN) hidden layers; f32 for raw
    # BN outputs (stats precision) and for the final 1-channel layer.
    out_dtype = jnp.bfloat16 if (fuse and P["use_act"] and k_tiles == 1) \
        else jnp.float32
    tile_m, M_pad = _choose_tile_m(M, tile_k, N_pad,
                                   jnp.dtype(out_dtype).itemsize)

    p_pad = jnp.pad(patches, ((0, M_pad - M), (0, K_pad - K)))
    y, stats = _conv_call(p_pad, P["w"], P["b"], tile_m=tile_m, tile_k=tile_k,
                          out_dtype=out_dtype, fuse=fuse, use_act=P["use_act"])

    y = y[:M, :Cout].reshape(N, Ho, Wo, Cout)

    if P["use_bn"]:
        # Combine per-M-tile partial sums -> train-mode BN statistics.
        s = jnp.sum(stats[:, 0, :Cout], axis=0)
        ss = jnp.sum(stats[:, 1, :Cout], axis=0)
        mean = s / M                                   # true M, not padded
        # TODO(synk): E[x^2]-mean^2 in f32 can cancel for |mean| >> std; a
        # shifted two-pass combine would be more robust at larger configs.
        var = jnp.maximum(ss / M - mean * mean, 0.0)
        inv = lax.rsqrt(var + _BN_EPS)
        scale = (P["gamma"] * inv).astype(jnp.float32)
        shift = (P["beta"] - mean * scale).astype(jnp.float32)
        pending_out = (scale, shift, P["use_act"])     # applied by next layer
    else:
        pending_out = None

    return y, pending_out


def nlayer_discriminator_forward(x_nchw, packed):
    """Forward pass of NLayerDiscriminator. Input / output are NCHW."""
    x = jnp.transpose(x_nchw, (0, 2, 3, 1))            # NCHW -> NHWC
    pending = None
    for P in packed:
        x, pending = _layer_forward(x, pending, P)
    if pending is not None:                            # defensive; last layer has no BN
        sc, sh, act = pending
        x = x * sc + sh
        if act:
            x = jnp.where(x >= 0.0, x, _NEG_SLOPE * x)
    return jnp.transpose(x, (0, 3, 1, 2)).astype(jnp.float32)


# ----------------------------------------------------------------------------
# Parameter construction (mirrors NLayerDiscriminator.__init__) and pre-packing.
# ----------------------------------------------------------------------------
def build_params(key, input_nc, ndf, n_layers):
    cfg = []
    # first conv: bias=True, no norm, LeakyReLU
    cfg.append(dict(cin=input_nc, cout=ndf, stride=2, has_bias=True,
                    use_bn=False, use_act=True))
    nf = ndf
    for _ in range(1, n_layers):
        nf_prev, nf = nf, min(nf * 2, 512)
        cfg.append(dict(cin=nf_prev, cout=nf, stride=2, has_bias=False,
                        use_bn=True, use_act=True))
    nf_prev, nf = nf, min(nf * 2, 512)
    cfg.append(dict(cin=nf_prev, cout=nf, stride=1, has_bias=False,
                    use_bn=True, use_act=True))
    # final conv: 1 output channel, bias=False, no norm, no activation
    cfg.append(dict(cin=nf, cout=1, stride=1, has_bias=False,
                    use_bn=False, use_act=False))

    layers = []
    for c in cfg:
        key, kw_, kb_ = jax.random.split(key, 3)
        w = (jax.random.normal(kw_, (c["cout"], c["cin"], 4, 4), jnp.float32) * 0.05)
        if c["has_bias"]:
            b = jax.random.normal(kb_, (c["cout"],), jnp.float32) * 0.05
        else:
            b = jnp.zeros((c["cout"],), jnp.float32)
        layers.append(dict(
            w=w, bias=b,
            gamma=jnp.ones((c["cout"],), jnp.float32),   # BatchNorm2d default init
            beta=jnp.zeros((c["cout"],), jnp.float32),
            stride=c["stride"], pad=1,
            use_bn=c["use_bn"], use_act=c["use_act"],
        ))
    return layers


def prepack_params(layers):
    """Hoist weight transpose/pad/bf16 packing out of the per-forward path."""
    packed = []
    for L in layers:
        w = L["w"]                                   # (Cout, Cin, kh, kw) OIHW
        Cout, Cin, kh, kw = w.shape
        K = kh * kw * Cin
        N_pad = _round_up(Cout, 128)
        K_pad = _round_up(K, 128)
        w_bytes = K_pad * N_pad * 2                  # bf16 slab
        if w_bytes <= _W_RESIDENT_MAX:
            tile_k = K_pad                           # fully resident, no K axis
        else:
            tile_k = max(128, (_W_RESIDENT_MAX // (N_pad * 2)) // 128 * 128)
            K_pad = _round_up(K_pad, tile_k)
        w_mat = jnp.transpose(w, (2, 3, 1, 0)).reshape(K, Cout).astype(jnp.bfloat16)
        w_pad = jnp.pad(w_mat, ((0, K_pad - K), (0, N_pad - Cout)))
        b_row = jnp.pad(L["bias"].astype(jnp.float32),
                        (0, N_pad - Cout)).reshape(1, N_pad)
        packed.append(dict(
            w=w_pad, b=b_row, gamma=L["gamma"], beta=L["beta"],
            kh=kh, kw=kw, stride=L["stride"], pad=L["pad"],
            use_bn=L["use_bn"], use_act=L["use_act"],
            K=K, K_pad=K_pad, N_pad=N_pad, Cout=Cout, tile_k=tile_k,
        ))
    return packed


# ----------------------------------------------------------------------------
# Pure-JAX reference (same bf16 operand rounding, f32 accumulation).
# ----------------------------------------------------------------------------
def reference_forward(x_nchw, layers, eps=_BN_EPS, neg_slope=_NEG_SLOPE):
    x = x_nchw
    for L in layers:
        xw = x.astype(jnp.bfloat16).astype(jnp.float32)
        ww = L["w"].astype(jnp.bfloat16).astype(jnp.float32)
        y = lax.conv_general_dilated(
            xw, ww, window_strides=(L["stride"], L["stride"]),
            padding=[(L["pad"], L["pad"])] * 2,
            dimension_numbers=("NCHW", "OIHW", "NCHW"))
        y = y + L["bias"][None, :, None, None]
        if L["use_bn"]:
            mean = jnp.mean(y, axis=(0, 2, 3), keepdims=True)
            var = jnp.var(y, axis=(0, 2, 3), keepdims=True)   # biased, train-mode BN
            y = (y - mean) * lax.rsqrt(var + eps)
            y = y * L["gamma"][None, :, None, None] + L["beta"][None, :, None, None]
        if L["use_act"]:
            y = jnp.where(y >= 0.0, y, neg_slope * y)
        x = y
    return x


if __name__ == "__main__":
    key = jax.random.PRNGKey(0)
    k_x, k_p = jax.random.split(key)

    # Small PatchGAN: input_nc=3, ndf=16, n_layers=3; spatial 32 keeps all output
    # sizes valid (32 -> 16 -> 8 -> 4 -> 3 -> 2).
    input_nc, ndf, n_layers = 3, 16, 3
    x = jax.random.normal(k_x, (2, input_nc, 32, 32), jnp.float32)
    layers = build_params(k_p, input_nc, ndf, n_layers)
    packed = prepack_params(layers)

    fwd = jax.jit(lambda inp: nlayer_discriminator_forward(inp, packed))
    out = jax.block_until_ready(fwd(x))
    ref = jax.block_until_ready(reference_forward(x, layers))

    assert out.shape == ref.shape == (2, 1, 2, 2), (out.shape, ref.shape)
    max_err = float(jnp.max(jnp.abs(out - ref)))
    assert jnp.allclose(out, ref, atol=5e-3, rtol=5e-3), max_err

    print("KERNEL_OK")
</pallas_src>

<mosaic_0001>
module attributes {stable_mosaic.version = 11 : i64} {
  func.func @_conv_kernel_single(%arg0: i32, %arg1: memref<256x128xbf16, #tpu.memory_space<vmem>>, %arg2: memref<128x128xbf16, #tpu.memory_space<vmem>>, %arg3: memref<1x128xf32, #tpu.memory_space<vmem>>, %arg4: memref<256x128xbf16, #tpu.memory_space<vmem>>, %arg5: memref<1x2x128xf32, #tpu.memory_space<vmem>>) attributes {dimension_semantics = [#tpu.dimension_semantics<parallel>], iteration_bounds = array<i64: 2>, scalar_prefetch = 0 : i64, scratch_operands = 0 : i64, tpu.core_type = #tpu.core_type<tc>, window_params = [{transform_indices = @transform_0, window_bounds = array<i64: 256, 128>}, {pipeline_mode = #tpu.pipeline_mode<synchronous>, transform_indices = @transform_1, window_bounds = array<i64: 128, 128>}, {pipeline_mode = #tpu.pipeline_mode<synchronous>, transform_indices = @transform_2, window_bounds = array<i64: 1, 128>}, {transform_indices = @transform_3, window_bounds = array<i64: 256, 128>}, {transform_indices = @transform_4, window_bounds = array<i64: 1, 2, 128>}]} {
    %c0 = arith.constant 0 : index
    %c0_0 = arith.constant 0 : index
    %0 = vector.load %arg1[%c0, %c0_0] : memref<256x128xbf16, #tpu.memory_space<vmem>>, vector<256x128xbf16>
    %c0_1 = arith.constant 0 : index
    %c0_2 = arith.constant 0 : index
    %1 = vector.load %arg2[%c0_1, %c0_2] : memref<128x128xbf16, #tpu.memory_space<vmem>>, vector<128x128xbf16>
    %cst = arith.constant dense<0.000000e+00> : vector<256x128xf32>
    %2 = tpu.matmul %0, %1, %cst {dimension_numbers = #tpu.dot_dimension_numbers<[1], [0], [0], [1], [0, 0, 1, 1], [], []>} : vector<256x128xbf16>, vector<128x128xbf16>, vector<256x128xf32> -> vector<256x128xf32>
    %cst_3 = arith.constant dense<0.000000e+00> : vector<128xf32>
    %3 = vector.multi_reduction <add>, %2, %cst_3 [0] : vector<256x128xf32> to vector<128xf32>
    %4 = vector.shape_cast %3 : vector<128xf32> to vector<1x128xf32>
    %5 = arith.mulf %2, %2 : vector<256x128xf32>
    %cst_4 = arith.constant dense<0.000000e+00> : vector<128xf32>
    %6 = vector.multi_reduction <add>, %5, %cst_4 [0] : vector<256x128xf32> to vector<128xf32>
    %7 = vector.shape_cast %6 : vector<128xf32> to vector<1x128xf32>
    %8 = tpu.concatenate %4, %7 in 0 : vector<1x128xf32>, vector<1x128xf32> -> vector<2x128xf32>
    %9 = vector.shape_cast %8 : vector<2x128xf32> to vector<1x2x128xf32>
    %c0_5 = arith.constant 0 : index
    %c0_6 = arith.constant 0 : index
    %c0_7 = arith.constant 0 : index
    %10 = vector.load %arg5[%c0_5, %c0_6, %c0_7] : memref<1x2x128xf32, #tpu.memory_space<vmem>>, vector<1x2x128xf32>
    tpu.vector_store %arg5[%c0_5, %c0_6, %c0_7], %9 {strides = array<i32>} : memref<1x2x128xf32, #tpu.memory_space<vmem>>, vector<1x2x128xf32>,
    %c0_8 = arith.constant 0 : index
    %c0_9 = arith.constant 0 : index
    %11 = vector.load %arg3[%c0_8, %c0_9] : memref<1x128xf32, #tpu.memory_space<vmem>>, vector<1x128xf32>
    %12 = vector.broadcast %11 : vector<1x128xf32> to vector<256x128xf32>
    %13 = arith.addf %2, %12 : vector<256x128xf32>
    %cst_10 = arith.constant 0.000000e+00 : f32
    %14 = vector.broadcast %cst_10 : f32 to vector<256x128xf32>
    %15 = arith.cmpf oge, %13, %14 : vector<256x128xf32>
    %cst_11 = arith.constant 2.000000e-01 : f32
    %16 = vector.broadcast %cst_11 : f32 to vector<256x128xf32>
    %17 = arith.mulf %16, %13 : vector<256x128xf32>
    %18 = arith.select %15, %13, %17 : vector<256x128xi1>, vector<256x128xf32>
    %19 = arith.truncf %18 : vector<256x128xf32> to vector<256x128xbf16>
    %c0_12 = arith.constant 0 : index
    %c0_13 = arith.constant 0 : index
    %20 = vector.load %arg4[%c0_12, %c0_13] : memref<256x128xbf16, #tpu.memory_space<vmem>>, vector<256x128xbf16>
    tpu.vector_store %arg4[%c0_12, %c0_13], %19 {strides = array<i32>} : memref<256x128xbf16, #tpu.memory_space<vmem>>, vector<256x128xbf16>,
    return
  }
  func.func @transform_0(%arg0: i32) -> (i32, i32) {
    %c0_i32 = arith.constant 0 : i32
    %c0_i32_0 = arith.constant 0 : i32
    return %arg0, %c0_i32 : i32, i32
  }
  func.func @transform_1(%arg0: i32) -> (i32, i32) {
    %c0_i32 = arith.constant 0 : i32
    %c0_i32_0 = arith.constant 0 : i32
    %c0_i32_1 = arith.constant 0 : i32
    return %c0_i32, %c0_i32_0 : i32, i32
  }
  func.func @transform_2(%arg0: i32) -> (i32, i32) {
    %c0_i32 = arith.constant 0 : i32
    %c0_i32_0 = arith.constant 0 : i32
    %c0_i32_1 = arith.constant 0 : i32
    return %c0_i32, %c0_i32_0 : i32, i32
  }
  func.func @transform_3(%arg0: i32) -> (i32, i32) {
    %c0_i32 = arith.constant 0 : i32
    %c0_i32_0 = arith.constant 0 : i32
    return %arg0, %c0_i32 : i32, i32
  }
  func.func @transform_4(%arg0: i32) -> (i32, i32, i32) {
    %c0_i32 = arith.constant 0 : i32
    %c0_i32_0 = arith.constant 0 : i32
    %c0_i32_1 = arith.constant 0 : i32
    return %arg0, %c0_i32, %c0_i32_0 : i32, i32, i32
  }
}

module attributes {stable_mosaic.version = 11 : i64} {
  func.func @_conv_kernel_single(%arg0: i32, %arg1: memref<64x256xbf16, #tpu.memory_space<vmem>>, %arg2: memref<256x128xbf16, #tpu.memory_space<vmem>>, %arg3: memref<1x128xf32, #tpu.memory_space<vmem>>, %arg4: memref<64x128xf32, #tpu.memory_space<vmem>>, %arg5: memref<1x2x128xf32, #tpu.memory_space<vmem>>) attributes {dimension_semantics = [#tpu.dimension_semantics<parallel>], iteration_bounds = array<i64: 2>, scalar_prefetch = 0 : i64, scratch_operands = 0 : i64, tpu.core_type = #tpu.core_type<tc>, window_params = [{transform_indices = @transform_0, window_bounds = array<i64: 64, 256>}, {pipeline_mode = #tpu.pipeline_mode<synchronous>, transform_indices = @transform_1, window_bounds = array<i64: 256, 128>}, {pipeline_mode = #tpu.pipeline_mode<synchronous>, transform_indices = @transform_2, window_bounds = array<i64: 1, 128>}, {transform_indices = @transform_3, window_bounds = array<i64: 64, 128>}, {transform_indices = @transform_4, window_bounds = array<i64: 1, 2, 128>}]} {
    %c0 = arith.constant 0 : index
    %c0_0 = arith.constant 0 : index
    %0 = vector.load %arg1[%c0, %c0_0] : memref<64x256xbf16, #tpu.memory_space<vmem>>, vector<64x256xbf16>
    %c0_1 = arith.constant 0 : index
    %c0_2 = arith.constant 0 : index
    %1 = vector.load %arg2[%c0_1, %c0_2] : memref<256x128xbf16, #tpu.memory_space<vmem>>, vector<256x128xbf16>
    %cst = arith.constant dense<0.000000e+00> : vector<64x128xf32>
    %2 = tpu.matmul %0, %1, %cst {dimension_numbers = #tpu.dot_dimension_numbers<[1], [0], [0], [1], [0, 0, 1, 1], [], []>} : vector<64x256xbf16>, vector<256x128xbf16>, vector<64x128xf32> -> vector<64x128xf32>
    %cst_3 = arith.constant dense<0.000000e+00> : vector<128xf32>
    %3 = vector.multi_reduction <add>, %2, %cst_3 [0] : vector<64x128xf32> to vector<128xf32>
    %4 = vector.shape_cast %3 : vector<128xf32> to vector<1x128xf32>
    %5 = arith.mulf %2, %2 : vector<64x128xf32>
    %cst_4 = arith.constant dense<0.000000e+00> : vector<128xf32>
    %6 = vector.multi_reduction <add>, %5, %cst_4 [0] : vector<64x128xf32> to vector<128xf32>
    %7 = vector.shape_cast %6 : vector<128xf32> to vector<1x128xf32>
    %8 = tpu.concatenate %4, %7 in 0 : vector<1x128xf32>, vector<1x128xf32> -> vector<2x128xf32>
    %9 = vector.shape_cast %8 : vector<2x128xf32> to vector<1x2x128xf32>
    %c0_5 = arith.constant 0 : index
    %c0_6 = arith.constant 0 : index
    %c0_7 = arith.constant 0 : index
    %10 = vector.load %arg5[%c0_5, %c0_6, %c0_7] : memref<1x2x128xf32, #tpu.memory_space<vmem>>, vector<1x2x128xf32>
    tpu.vector_store %arg5[%c0_5, %c0_6, %c0_7], %9 {strides = array<i32>} : memref<1x2x128xf32, #tpu.memory_space<vmem>>, vector<1x2x128xf32>,
    %c0_8 = arith.constant 0 : index
    %c0_9 = arith.constant 0 : index
    %11 = vector.load %arg4[%c0_8, %c0_9] : memref<64x128xf32, #tpu.memory_space<vmem>>, vector<64x128xf32>
    tpu.vector_store %arg4[%c0_8, %c0_9], %2 {strides = array<i32>} : memref<64x128xf32, #tpu.memory_space<vmem>>, vector<64x128xf32>,
    return
  }
  func.func @transform_0(%arg0: i32) -> (i32, i32) {
    %c0_i32 = arith.constant 0 : i32
    %c0_i32_0 = arith.constant 0 : i32
    return %arg0, %c0_i32 : i32, i32
  }
  func.func @transform_1(%arg0: i32) -> (i32, i32) {
    %c0_i32 = arith.constant 0 : i32
    %c0_i32_0 = arith.constant 0 : i32
    %c0_i32_1 = arith.constant 0 : i32
    return %c0_i32, %c0_i32_0 : i32, i32
  }
  func.func @transform_2(%arg0: i32) -> (i32, i32) {
    %c0_i32 = arith.constant 0 : i32
    %c0_i32_0 = arith.constant 0 : i32
    %c0_i32_1 = arith.constant 0 : i32
    return %c0_i32, %c0_i32_0 : i32, i32
  }
  func.func @transform_3(%arg0: i32) -> (i32, i32) {
    %c0_i32 = arith.constant 0 : i32
    %c0_i32_0 = arith.constant 0 : i32
    return %arg0, %c0_i32 : i32, i32
  }
  func.func @transform_4(%arg0: i32) -> (i32, i32, i32) {
    %c0_i32 = arith.constant 0 : i32
    %c0_i32_0 = arith.constant 0 : i32
    %c0_i32_1 = arith.constant 0 : i32
    return %arg0, %c0_i32, %c0_i32_0 : i32, i32, i32
  }
}

module attributes {stable_mosaic.version = 11 : i64} {
  func.func @_conv_kernel_single(%arg0: i32, %arg1: memref<32x512xbf16, #tpu.memory_space<vmem>>, %arg2: memref<512x128xbf16, #tpu.memory_space<vmem>>, %arg3: memref<1x128xf32, #tpu.memory_space<vmem>>, %arg4: memref<32x128xf32, #tpu.memory_space<vmem>>, %arg5: memref<1x2x128xf32, #tpu.memory_space<vmem>>) attributes {dimension_semantics = [#tpu.dimension_semantics<parallel>], iteration_bounds = array<i64: 1>, scalar_prefetch = 0 : i64, scratch_operands = 0 : i64, tpu.core_type = #tpu.core_type<tc>, window_params = [{transform_indices = @transform_0, window_bounds = array<i64: 32, 512>}, {pipeline_mode = #tpu.pipeline_mode<synchronous>, transform_indices = @transform_1, window_bounds = array<i64: 512, 128>}, {pipeline_mode = #tpu.pipeline_mode<synchronous>, transform_indices = @transform_2, window_bounds = array<i64: 1, 128>}, {transform_indices = @transform_3, window_bounds = array<i64: 32, 128>}, {transform_indices = @transform_4, window_bounds = array<i64: 1, 2, 128>}]} {
    %c0 = arith.constant 0 : index
    %c0_0 = arith.constant 0 : index
    %0 = vector.load %arg1[%c0, %c0_0] : memref<32x512xbf16, #tpu.memory_space<vmem>>, vector<32x512xbf16>
    %c0_1 = arith.constant 0 : index
    %c0_2 = arith.constant 0 : index
    %1 = vector.load %arg2[%c0_1, %c0_2] : memref<512x128xbf16, #tpu.memory_space<vmem>>, vector<512x128xbf16>
    %cst = arith.constant dense<0.000000e+00> : vector<32x128xf32>
    %2 = tpu.matmul %0, %1, %cst {dimension_numbers = #tpu.dot_dimension_numbers<[1], [0], [0], [1], [0, 0, 1, 1], [], []>} : vector<32x512xbf16>, vector<512x128xbf16>, vector<32x128xf32> -> vector<32x128xf32>
    %cst_3 = arith.constant dense<0.000000e+00> : vector<128xf32>
    %3 = vector.multi_reduction <add>, %2, %cst_3 [0] : vector<32x128xf32> to vector<128xf32>
    %4 = vector.shape_cast %3 : vector<128xf32> to vector<1x128xf32>
    %5 = arith.mulf %2, %2 : vector<32x128xf32>
    %cst_4 = arith.constant dense<0.000000e+00> : vector<128xf32>
    %6 = vector.multi_reduction <add>, %5, %cst_4 [0] : vector<32x128xf32> to vector<128xf32>
    %7 = vector.shape_cast %6 : vector<128xf32> to vector<1x128xf32>
    %8 = tpu.concatenate %4, %7 in 0 : vector<1x128xf32>, vector<1x128xf32> -> vector<2x128xf32>
    %9 = vector.shape_cast %8 : vector<2x128xf32> to vector<1x2x128xf32>
    %c0_5 = arith.constant 0 : index
    %c0_6 = arith.constant 0 : index
    %c0_7 = arith.constant 0 : index
    %10 = vector.load %arg5[%c0_5, %c0_6, %c0_7] : memref<1x2x128xf32, #tpu.memory_space<vmem>>, vector<1x2x128xf32>
    tpu.vector_store %arg5[%c0_5, %c0_6, %c0_7], %9 {strides = array<i32>} : memref<1x2x128xf32, #tpu.memory_space<vmem>>, vector<1x2x128xf32>,
    %c0_8 = arith.constant 0 : index
    %c0_9 = arith.constant 0 : index
    %11 = vector.load %arg4[%c0_8, %c0_9] : memref<32x128xf32, #tpu.memory_space<vmem>>, vector<32x128xf32>
    tpu.vector_store %arg4[%c0_8, %c0_9], %2 {strides = array<i32>} : memref<32x128xf32, #tpu.memory_space<vmem>>, vector<32x128xf32>,
    return
  }
  func.func @transform_0(%arg0: i32) -> (i32, i32) {
    %c0_i32 = arith.constant 0 : i32
    %c0_i32_0 = arith.constant 0 : i32
    return %arg0, %c0_i32 : i32, i32
  }
  func.func @transform_1(%arg0: i32) -> (i32, i32) {
    %c0_i32 = arith.constant 0 : i32
    %c0_i32_0 = arith.constant 0 : i32
    %c0_i32_1 = arith.constant 0 : i32
    return %c0_i32, %c0_i32_0 : i32, i32
  }
  func.func @transform_2(%arg0: i32) -> (i32, i32) {
    %c0_i32 = arith.constant 0 : i32
    %c0_i32_0 = arith.constant 0 : i32
    %c0_i32_1 = arith.constant 0 : i32
    return %c0_i32, %c0_i32_0 : i32, i32
  }
  func.func @transform_3(%arg0: i32) -> (i32, i32) {
    %c0_i32 = arith.constant 0 : i32
    %c0_i32_0 = arith.constant 0 : i32
    return %arg0, %c0_i32 : i32, i32
  }
  func.func @transform_4(%arg0: i32) -> (i32, i32, i32) {
    %c0_i32 = arith.constant 0 : i32
    %c0_i32_0 = arith.constant 0 : i32
    %c0_i32_1 = arith.constant 0 : i32
    return %arg0, %c0_i32, %c0_i32_0 : i32, i32, i32
  }
}

module attributes {stable_mosaic.version = 11 : i64} {
  func.func @_conv_kernel_single(%arg0: i32, %arg1: memref<32x1024xbf16, #tpu.memory_space<vmem>>, %arg2: memref<1024x128xbf16, #tpu.memory_space<vmem>>, %arg3: memref<1x128xf32, #tpu.memory_space<vmem>>, %arg4: memref<32x128xf32, #tpu.memory_space<vmem>>, %arg5: memref<1x2x128xf32, #tpu.memory_space<vmem>>) attributes {dimension_semantics = [#tpu.dimension_semantics<parallel>], iteration_bounds = array<i64: 1>, scalar_prefetch = 0 : i64, scratch_operands = 0 : i64, tpu.core_type = #tpu.core_type<tc>, window_params = [{transform_indices = @transform_0, window_bounds = array<i64: 32, 1024>}, {pipeline_mode = #tpu.pipeline_mode<synchronous>, transform_indices = @transform_1, window_bounds = array<i64: 1024, 128>}, {pipeline_mode = #tpu.pipeline_mode<synchronous>, transform_indices = @transform_2, window_bounds = array<i64: 1, 128>}, {transform_indices = @transform_3, window_bounds = array<i64: 32, 128>}, {transform_indices = @transform_4, window_bounds = array<i64: 1, 2, 128>}]} {
    %c0 = arith.constant 0 : index
    %c0_0 = arith.constant 0 : index
    %0 = vector.load %arg1[%c0, %c0_0] : memref<32x1024xbf16, #tpu.memory_space<vmem>>, vector<32x1024xbf16>
    %c0_1 = arith.constant 0 : index
    %c0_2 = arith.constant 0 : index
    %1 = vector.load %arg2[%c0_1, %c0_2] : memref<1024x128xbf16, #tpu.memory_space<vmem>>, vector<1024x128xbf16>
    %cst = arith.constant dense<0.000000e+00> : vector<32x128xf32>
    %2 = tpu.matmul %0, %1, %cst {dimension_numbers = #tpu.dot_dimension_numbers<[1], [0], [0], [1], [0, 0, 1, 1], [], []>} : vector<32x1024xbf16>, vector<1024x128xbf16>, vector<32x128xf32> -> vector<32x128xf32>
    %cst_3 = arith.constant dense<0.000000e+00> : vector<128xf32>
    %3 = vector.multi_reduction <add>, %2, %cst_3 [0] : vector<32x128xf32> to vector<128xf32>
    %4 = vector.shape_cast %3 : vector<128xf32> to vector<1x128xf32>
    %5 = arith.mulf %2, %2 : vector<32x128xf32>
    %cst_4 = arith.constant dense<0.000000e+00> : vector<128xf32>
    %6 = vector.multi_reduction <add>, %5, %cst_4 [0] : vector<32x128xf32> to vector<128xf32>
    %7 = vector.shape_cast %6 : vector<128xf32> to vector<1x128xf32>
    %8 = tpu.concatenate %4, %7 in 0 : vector<1x128xf32>, vector<1x128xf32> -> vector<2x128xf32>
    %9 = vector.shape_cast %8 : vector<2x128xf32> to vector<1x2x128xf32>
    %c0_5 = arith.constant 0 : index
    %c0_6 = arith.constant 0 : index
    %c0_7 = arith.constant 0 : index
    %10 = vector.load %arg5[%c0_5, %c0_6, %c0_7] : memref<1x2x128xf32, #tpu.memory_space<vmem>>, vector<1x2x128xf32>
    tpu.vector_store %arg5[%c0_5, %c0_6, %c0_7], %9 {strides = array<i32>} : memref<1x2x128xf32, #tpu.memory_space<vmem>>, vector<1x2x128xf32>,
    %c0_8 = arith.constant 0 : index
    %c0_9 = arith.constant 0 : index
    %11 = vector.load %arg4[%c0_8, %c0_9] : memref<32x128xf32, #tpu.memory_space<vmem>>, vector<32x128xf32>
    tpu.vector_store %arg4[%c0_8, %c0_9], %2 {strides = array<i32>} : memref<32x128xf32, #tpu.memory_space<vmem>>, vector<32x128xf32>,
    return
  }
  func.func @transform_0(%arg0: i32) -> (i32, i32) {
    %c0_i32 = arith.constant 0 : i32
    %c0_i32_0 = arith.constant 0 : i32
    return %arg0, %c0_i32 : i32, i32
  }
  func.func @transform_1(%arg0: i32) -> (i32, i32) {
    %c0_i32 = arith.constant 0 : i32
    %c0_i32_0 = arith.constant 0 : i32
    %c0_i32_1 = arith.constant 0 : i32
    return %c0_i32, %c0_i32_0 : i32, i32
  }
  func.func @transform_2(%arg0: i32) -> (i32, i32) {
    %c0_i32 = arith.constant 0 : i32
    %c0_i32_0 = arith.constant 0 : i32
    %c0_i32_1 = arith.constant 0 : i32
    return %c0_i32, %c0_i32_0 : i32, i32
  }
  func.func @transform_3(%arg0: i32) -> (i32, i32) {
    %c0_i32 = arith.constant 0 : i32
    %c0_i32_0 = arith.constant 0 : i32
    return %arg0, %c0_i32 : i32, i32
  }
  func.func @transform_4(%arg0: i32) -> (i32, i32, i32) {
    %c0_i32 = arith.constant 0 : i32
    %c0_i32_0 = arith.constant 0 : i32
    %c0_i32_1 = arith.constant 0 : i32
    return %arg0, %c0_i32, %c0_i32_0 : i32, i32, i32
  }
}

module attributes {stable_mosaic.version = 11 : i64} {
  func.func @_conv_kernel_single(%arg0: i32, %arg1: memref<16x2048xbf16, #tpu.memory_space<vmem>>, %arg2: memref<2048x128xbf16, #tpu.memory_space<vmem>>, %arg3: memref<1x128xf32, #tpu.memory_space<vmem>>, %arg4: memref<16x128xf32, #tpu.memory_space<vmem>>, %arg5: memref<1x2x128xf32, #tpu.memory_space<vmem>>) attributes {dimension_semantics = [#tpu.dimension_semantics<parallel>], iteration_bounds = array<i64: 1>, scalar_prefetch = 0 : i64, scratch_operands = 0 : i64, tpu.core_type = #tpu.core_type<tc>, window_params = [{transform_indices = @transform_0, window_bounds = array<i64: 16, 2048>}, {pipeline_mode = #tpu.pipeline_mode<synchronous>, transform_indices = @transform_1, window_bounds = array<i64: 2048, 128>}, {pipeline_mode = #tpu.pipeline_mode<synchronous>, transform_indices = @transform_2, window_bounds = array<i64: 1, 128>}, {transform_indices = @transform_3, window_bounds = array<i64: 16, 128>}, {transform_indices = @transform_4, window_bounds = array<i64: 1, 2, 128>}]} {
    %c0 = arith.constant 0 : index
    %c0_0 = arith.constant 0 : index
    %0 = vector.load %arg1[%c0, %c0_0] : memref<16x2048xbf16, #tpu.memory_space<vmem>>, vector<16x2048xbf16>
    %c0_1 = arith.constant 0 : index
    %c0_2 = arith.constant 0 : index
    %1 = vector.load %arg2[%c0_1, %c0_2] : memref<2048x128xbf16, #tpu.memory_space<vmem>>, vector<2048x128xbf16>
    %cst = arith.constant dense<0.000000e+00> : vector<16x128xf32>
    %2 = tpu.matmul %0, %1, %cst {dimension_numbers = #tpu.dot_dimension_numbers<[1], [0], [0], [1], [0, 0, 1, 1], [], []>} : vector<16x2048xbf16>, vector<2048x128xbf16>, vector<16x128xf32> -> vector<16x128xf32>
    %cst_3 = arith.constant dense<0.000000e+00> : vector<128xf32>
    %3 = vector.multi_reduction <add>, %2, %cst_3 [0] : vector<16x128xf32> to vector<128xf32>
    %4 = vector.shape_cast %3 : vector<128xf32> to vector<1x128xf32>
    %5 = arith.mulf %2, %2 : vector<16x128xf32>
    %cst_4 = arith.constant dense<0.000000e+00> : vector<128xf32>
    %6 = vector.multi_reduction <add>, %5, %cst_4 [0] : vector<16x128xf32> to vector<128xf32>
    %7 = vector.shape_cast %6 : vector<128xf32> to vector<1x128xf32>
    %8 = tpu.concatenate %4, %7 in 0 : vector<1x128xf32>, vector<1x128xf32> -> vector<2x128xf32>
    %9 = vector.shape_cast %8 : vector<2x128xf32> to vector<1x2x128xf32>
    %c0_5 = arith.constant 0 : index
    %c0_6 = arith.constant 0 : index
    %c0_7 = arith.constant 0 : index
    %10 = vector.load %arg5[%c0_5, %c0_6, %c0_7] : memref<1x2x128xf32, #tpu.memory_space<vmem>>, vector<1x2x128xf32>
    tpu.vector_store %arg5[%c0_5, %c0_6, %c0_7], %9 {strides = array<i32>} : memref<1x2x128xf32, #tpu.memory_space<vmem>>, vector<1x2x128xf32>,
    %c0_8 = arith.constant 0 : index
    %c0_9 = arith.constant 0 : index
    %11 = vector.load %arg3[%c0_8, %c0_9] : memref<1x128xf32, #tpu.memory_space<vmem>>, vector<1x128xf32>
    %12 = vector.broadcast %11 : vector<1x128xf32> to vector<16x128xf32>
    %13 = arith.addf %2, %12 : vector<16x128xf32>
    %c0_10 = arith.constant 0 : index
    %c0_11 = arith.constant 0 : index
    %14 = vector.load %arg4[%c0_10, %c0_11] : memref<16x128xf32, #tpu.memory_space<vmem>>, vector<16x128xf32>
    tpu.vector_store %arg4[%c0_10, %c0_11], %13 {strides = array<i32>} : memref<16x128xf32, #tpu.memory_space<vmem>>, vector<16x128xf32>,
    return
  }
  func.func @transform_0(%arg0: i32) -> (i32, i32) {
    %c0_i32 = arith.constant 0 : i32
    %c0_i32_0 = arith.constant 0 : i32
    return %arg0, %c0_i32 : i32, i32
  }
  func.func @transform_1(%arg0: i32) -> (i32, i32) {
    %c0_i32 = arith.constant 0 : i32
    %c0_i32_0 = arith.constant 0 : i32
    %c0_i32_1 = arith.constant 0 : i32
    return %c0_i32, %c0_i32_0 : i32, i32
  }
  func.func @transform_2(%arg0: i32) -> (i32, i32) {
    %c0_i32 = arith.constant 0 : i32
    %c0_i32_0 = arith.constant 0 : i32
    %c0_i32_1 = arith.constant 0 : i32
    return %c0_i32, %c0_i32_0 : i32, i32
  }
  func.func @transform_3(%arg0: i32) -> (i32, i32) {
    %c0_i32 = arith.constant 0 : i32
    %c0_i32_0 = arith.constant 0 : i32
    return %arg0, %c0_i32 : i32, i32
  }
  func.func @transform_4(%arg0: i32) -> (i32, i32, i32) {
    %c0_i32 = arith.constant 0 : i32
    %c0_i32_0 = arith.constant 0 : i32
    %c0_i32_1 = arith.constant 0 : i32
    return %arg0, %c0_i32, %c0_i32_0 : i32, i32, i32
  }
}

</mosaic_0001>

<bundles_post_ra>
// kernel: _lambda_.6
= control target key start
LH: loop header
LB: loop body
LE: loop exit
PB: predicated region body
PF: predicated region fallthrough
CT: control target
= control target key end

     0   :  { %s752_s15 = smov 0   ;;  %s852_s0 = inlined_call_operand.vmem [shape: bf16[128,256], index: 0, kind: input, shape index: {}]   ;;  %s853_s1 = inlined_call_operand.vmem [shape: bf16[256,128], index: 1, kind: input, shape index: {}]   ;;  %s854_s2 = inlined_call_operand.vmem [shape: f32[1,128], index: 2, kind: input, shape index: {}]   ;;  %s855_s3 = inlined_call_operand.vmem [shape: f32[128,128], index: 3, kind: output, shape index: {0}]   ;;  %s856_s4 = inlined_call_operand.vmem [shape: f32[2,2,128], index: 4, kind: output, shape index: {1}]  }
   0x1 LB: > { %s758_s16 = sadd.s32 4294967295, %s725_s15   ;;  %p593_p0 = scmp.ge.s32.totalorder %s725_s15, 1  ;;  %s725_s15 = sphi %s752_s15, %s15_s15  }
   0x2   : > { %p167_p1 = scmp.lt.s32.totalorder %s725_s15, 3 }
   0x4   : > { %p168_p2 = pnand %p593_p0, %p167_p1 }
   0x5   : > { %s594_s18 = sshll.u32 (!%p168_p2), %s758_s16, 3  ;;  %p211_p4 = scmp.lt.s32.totalorder (!%p168_p2), %s758_s16, 1 }
   0x6   : > { %171 = sbr.rel (%p168_p2) target bundleno = 279 (0x117), region = 32  ;;  %p199_p3 = scmp.lt.s32.totalorder (!%p168_p2), %s594_s18, 15 }
   0xb   : > { %v691_v0 = vld [vmem:[%s853_s1 + $0x78] sm:$0xff]   ;;  %v693_v2 = vld [vmem:[%s853_s1 + $0x70] sm:$0xff]   ;;  %v695_v4 = vld [vmem:[%s853_s1 + $0x68] sm:$0xff]   ;;  %s858_s18 = smov (!%p199_p3, %s594_s18), 15  ;;  %s860_s16 = smov (!%p211_p4, %s758_s16), 1  ;;  %vm491_vm0 = vcmask 1040384  }
   0xc   : > { %v692_v1 = vld [vmem:[%s853_s1 + $0x38] sm:$0xff]   ;;  %627 = vmatprep.subr.bf16.mxu0 %v691_v0  ;;  %667 = vmatprep.subr.bf16.mxu1 %v691_v0  ;;  %v694_v3 = vld [vmem:[%s853_s1 + $0x30] sm:$0xff]   ;;  %v696_v5 = vld [vmem:[%s853_s1 + $0x28] sm:$0xff]   ;;  %s626_s7 = sshll.u32 %s858_s18, 3  ;;  %s599_s18 = sshll.u32 %s860_s16, 1 }
   0xd   : > { %628 = vmatpush3.bf16.msra.mxu0 %v692_v1  ;;  %675 = vmatpush3.bf16.msra.mxu1 %v692_v1  ;;  %v697_v6 = vld [vmem:[%s853_s1 + $0x60] sm:$0xff]   ;;  %v699_v8 = vld [vmem:[%s853_s1 + $0x58] sm:$0xff]   ;;  %s798_s12 = scalar_lea.vmem %s852_s0, %s626_s7  ;;  %v701_v10 = vld [vmem:[%s853_s1 + $0x50] sm:$0xff]   ;;  %s834_s5 = scalar_lea.vmem %s855_s3, %s626_s7 }
   0xe   : > { %629 = vmatprep.subr.bf16.mxu0 %v693_v2  ;;  %668 = vmatprep.subr.bf16.mxu1 %v693_v2  ;;  %v698_v7 = vld [vmem:[%s853_s1 + $0x20] sm:$0xff]   ;;  %v700_v9 = vld [vmem:[%s853_s1 + $0x18] sm:$0xff]   ;;  %v702_v13 = vld [vmem:[%s853_s1 + $0x10] sm:$0xff]   ;;  %s214_s8 = scalar_lea.vmem %s856_s4, %s599_s18 }
   0xf   : > { %v709_v11 = vld [vmem:[%s798_s12 + $0x4] ss:$8 sps:$4 sm:$0xff]   ;;  %v707_v18 = vld [vmem:[%s798_s12] ss:$8 sps:$4 sm:$0xff]   ;;  %v713_v20 = vld [vmem:[%s798_s12 + $0x14] ss:$8 sps:$4 sm:$0xff]  }
  0x10   : > { %v712_v12 = vld [vmem:[%s798_s12 + $0x24] ss:$8 sps:$4 sm:$0xff]   ;;  %424 = vmatprep.mubr.bf16.mxu0 %v709_v11  ;;  %v710_v19 = vld [vmem:[%s798_s12 + $0x20] ss:$8 sps:$4 sm:$0xff]   ;;  %v716_v21 = vld [vmem:[%s798_s12 + $0x34] ss:$8 sps:$4 sm:$0xff]  }
  0x11   : > { %630 = vmatpush3.bf16.msra.mxu0 %v694_v3  ;;  %676 = vmatpush3.bf16.msra.mxu1 %v694_v3  ;;  %v703_v14 = vld [vmem:[%s853_s1 + $0x48] sm:$0xff]   ;;  %v705_v16 = vld [vmem:[%s853_s1 + $0x40] sm:$0xff]   ;;  %v715_v22 = vld [vmem:[%s798_s12 + $0x10] ss:$8 sps:$4 sm:$0xff]  }
  0x12   : > { %631 = vmatprep.subr.bf16.mxu0 %v695_v4  ;;  %669 = vmatprep.subr.bf16.mxu1 %v695_v4  ;;  %v704_v15 = vld [vmem:[%s853_s1 + $0x8] sm:$0xff]   ;;  %v706_v17 = vld [vmem:[%s853_s1] sm:$0xff]   ;;  %v718_v23 = vld [vmem:[%s798_s12 + $0x30] ss:$8 sps:$4 sm:$0xff]  }
  0x13   : > { %440 = vmatprep.mubr.bf16.mxu1 %v712_v12 }
  0x15   : > { %632 = vmatpush3.bf16.msra.mxu0 %v696_v5  ;;  %677 = vmatpush3.bf16.msra.mxu1 %v696_v5 }
  0x16   : > { %633 = vmatprep.subr.bf16.mxu0 %v697_v6  ;;  %670 = vmatprep.subr.bf16.mxu1 %v697_v6 }
  0x19   : > { %634 = vmatpush3.bf16.msra.mxu0 %v698_v7  ;;  %678 = vmatpush3.bf16.msra.mxu1 %v698_v7 }
  0x1a   : > { %635 = vmatprep.subr.bf16.mxu0 %v699_v8  ;;  %671 = vmatprep.subr.bf16.mxu1 %v699_v8 }
  0x1d   : > { %636 = vmatpush3.bf16.msra.mxu0 %v700_v9  ;;  %679 = vmatpush3.bf16.msra.mxu1 %v700_v9 }
  0x1e   : > { %637 = vmatprep.subr.bf16.mxu0 %v701_v10  ;;  %672 = vmatprep.subr.bf16.mxu1 %v701_v10 }
  0x21   : > { %638 = vmatpush3.bf16.msra.mxu0 %v702_v13  ;;  %680 = vmatpush3.bf16.msra.mxu1 %v702_v13 }
  0x22   : > { %639 = vmatprep.subr.bf16.mxu0 %v703_v14  ;;  %673 = vmatprep.subr.bf16.mxu1 %v703_v14 }
  0x25   : > { %640 = vmatpush3.bf16.msra.mxu0 %v704_v15  ;;  %681 = vmatpush3.bf16.msra.mxu1 %v704_v15 }
  0x26   : > { %641 = vmatprep.subr.bf16.mxu0 %v705_v16  ;;  %674 = vmatprep.subr.bf16.mxu1 %v705_v16 }
  0x29   : > { %642 = vmatpush3.bf16.msra.mxu0 %v706_v17  ;;  %682 = vmatpush3.bf16.msra.mxu1 %v706_v17 }
  0x2c   : > { %425 = vmatmul.mubr.bf16.vlgmr.msra.gmra.mxu0 %v707_v18  ;;  %441 = vmatmul.mubr.bf16.vlgmr.msra.gmra.mxu1 %v710_v19 }
  0x2d   : > { %432 = vmatprep.mubr.bf16.mxu0 %v713_v20  ;;  %448 = vmatprep.mubr.bf16.mxu1 %v716_v21 }
  0x34   : > { %433 = vmatmul.mubr.bf16.gmra.mxu0 %v715_v22  ;;  %449 = vmatmul.mubr.bf16.gmra.mxu1 %v718_v23 }
  0xec   : > { %v643_v24 = vpop.f32.mrf.mxu0  ;;  %v655_v25 = vpop.f32.mrf.mxu1 }
  0xee   : > { %v644_v26 = vpop.f32.mrf.mxu0  ;;  %v656_v27 = vpop.f32.mrf.mxu1 }
  0xef   : > { %v645_v28 = vadd.f32 %v644_v26, %v643_v24  ;;  %v657_v29 = vadd.f32 %v656_v27, %v655_v25 }
  0xf0   : > { %v646_v30 = vpop.f32.mrf.mxu0  ;;  %v658_v31 = vpop.f32.mrf.mxu1 }
  0xf1   : > { %494 = vst [vmem:[%s834_s5] sm:$0xff] %v645_v28  ;;  %498 = vst [vmem:[%s834_s5 + $0x20] sm:$0xff] %v657_v29  ;;  %v470_v45 = vmul.f32 %v645_v28, %v645_v28  ;;  %v474_v57 = vmul.f32 %v657_v29, %v657_v29 }
  0xf2   : > { %v647_v32 = vpop.f32.mrf.mxu0  ;;  %v659_v33 = vpop.f32.mrf.mxu1 }
  0xf3   : > { %v648_v34 = vadd.f32 %v647_v32, %v646_v30  ;;  %v660_v35 = vadd.f32 %v659_v33, %v658_v31 }
  0xf4   : > { %v649_v36 = vpop.f32.mrf.mxu0  ;;  %v661_v37 = vpop.f32.mrf.mxu1 }
  0xf5   : > { %495 = vst [vmem:[%s834_s5 + $0x8] sm:$0xff] %v648_v34  ;;  %499 = vst [vmem:[%s834_s5 + $0x28] sm:$0xff] %v660_v35  ;;  %v471_v40 = vmul.f32 %v648_v34, %v648_v34  ;;  %v457_v46 = vadd.f32 %v648_v34, %v645_v28  ;;  %v475_v60 = vmul.f32 %v660_v35, %v660_v35 }
  0xf6   : > { %v650_v38 = vpop.f32.mrf.mxu0  ;;  %v662_v39 = vpop.f32.mrf.mxu1 }
  0xf7   : > { %v651_v41 = vadd.f32 %v650_v38, %v649_v36  ;;  %v663_v42 = vadd.f32 %v662_v39, %v661_v37  ;;  %v478_v50 = vadd.f32 %v471_v40, %v470_v45 }
  0xf8   : > { %v652_v43 = vpop.f32.mrf.mxu0  ;;  %v664_v44 = vpop.f32.mrf.mxu1 }
  0xf9   : > { %v472_v47 = vmul.f32 %v651_v41, %v651_v41  ;;  %496 = vst [vmem:[%s834_s5 + $0x10] sm:$0xff] %v651_v41  ;;  %500 = vst [vmem:[%s834_s5 + $0x30] sm:$0xff] %v663_v42  ;;  %v458_v51 = vadd.f32 %v651_v41, %v457_v46  ;;  %v476_v63 = vmul.f32 %v663_v42, %v663_v42 }
  0xfa   : > { %v653_v48 = vpop.f32.mrf.mxu0  ;;  %v665_v49 = vpop.f32.mrf.mxu1 }
  0xfb   : > { %v654_v52 = vadd.f32 %v653_v48, %v652_v43  ;;  %v666_v53 = vadd.f32 %v665_v49, %v664_v44  ;;  %v479_v54 = vadd.f32 %v478_v50, %v472_v47 }
  0xfd   : > { %v459_v55 = vadd.f32 %v654_v52, %v458_v51  ;;  %v473_v56 = vmul.f32 %v654_v52, %v654_v52  ;;  %497 = vst [vmem:[%s834_s5 + $0x18] sm:$0xff] %v654_v52  ;;  %501 = vst [vmem:[%s834_s5 + $0x38] sm:$0xff] %v666_v53  ;;  %v477_v3 = vmul.f32 %v666_v53, %v666_v53 }
  0xff   : > { %v460_v58 = vadd.f32 %v657_v29, %v459_v55  ;;  %v480_v59 = vadd.f32 %v479_v54, %v473_v56 }
 0x101   : > { %v481_v61 = vadd.f32 %v480_v59, %v474_v57  ;;  %v461_v62 = vadd.f32 %v660_v35, %v460_v58 }
 0x103   : > { %v462_v0 = vadd.f32 %v663_v42, %v461_v62  ;;  %v482_v1 = vadd.f32 %v481_v61, %v475_v60 }
 0x105   : > { %v463_v2 = vadd.f32 %v666_v53, %v462_v0  ;;  %v483_v4 = vadd.f32 %v482_v1, %v476_v63 }
 0x107   : > { %v464_v5 = vrot.slane %v463_v2, 4  ;;  %v484_v6 = vadd.f32 %v483_v4, %v477_v3 }
 0x109   : > { %v465_v7 = vadd.f32 %v464_v5, %v463_v2  ;;  %v485_v8 = vrot.slane %v484_v6, 4 }
 0x10b   : > { %v466_v9 = vrot.slane %v465_v7, 2  ;;  %v486_v10 = vadd.f32 %v485_v8, %v484_v6 }
 0x10d   : > { %v467_v11 = vadd.f32 %v466_v9, %v465_v7  ;;  %v487_v12 = vrot.slane %v486_v10, 2 }
 0x10f   : > { %v468_v13 = vrot.slane %v467_v11, 1  ;;  %v488_v14 = vadd.f32 %v487_v12, %v486_v10 }
 0x111   : > { %v489_v15 = vrot.slane %v488_v14, 1  ;;  %v469_v16 = vadd.f32 %v468_v13, %v467_v11 }
 0x113   : > { %v490_v17 = vadd.f32 %v489_v15, %v488_v14 }
 0x115   : > { %v492_v18 = vsel %vm491_vm0, %v469_v16, %v490_v17 }
 0x116   : > { %493 = vst [vmem:[%s214_s8] sm:$0x3] %v492_v18 }
 0x117 PF: > { %s15_s15 = sadd.s32 1, %s725_s15  }
 0x118   : > { %p12_p5 = scmp.ge.s32.totalorder %s15_s15, 4  }
 0x11a   :  { %14 = sbr.rel (!%p12_p5) target bundleno = 1 (0x1), region = 74 }

// kernel: _lambda_.5
= control target key start
LH: loop header
LB: loop body
LE: loop exit
PB: predicated region body
PF: predicated region fallthrough
CT: control target
= control target key end

     0   :  { %10 = vsyncpa [#allocation3], 0  ;;  %s1818_s0 = inlined_call_operand.vmem [shape: bf16[512,128], index: 0, kind: input, shape index: {}]   ;;  %s1819_s1 = inlined_call_operand.vmem [shape: bf16[128,128], index: 1, kind: input, shape index: {}]   ;;  %s1820_s2 = inlined_call_operand.vmem [shape: f32[1,128], index: 2, kind: input, shape index: {}]   ;;  %s1821_s3 = inlined_call_operand.vmem [shape: bf16[512,128], index: 3, kind: output, shape index: {0}]   ;;  %s1822_s4 = inlined_call_operand.hbm [shape: f32[2,2,128], index: 4, kind: output, shape index: {1}]  }
   0x1   :  { %12 = vsyncpa [#allocation3 + $0x1], 0  ;;  %s1513_s15 = smov 0   ;;  %s1515_s16 = smov 0  }
   0x2   :  { %s1517_s17 = smov 0   ;;  %s1519_s18 = smov 0  }
   0x3 LB: > { %s1076_s19 = sadd.s32 4294967295, %s1485_s18   ;;  %s1077_s20 = sadd.s32 4294967294, %s1485_s18   ;;  %s1485_s18 = sphi %s1519_s18, %s1828_s18   ;;  %s1481_s17 = sphi %s1517_s17, %s1827_s17   ;;  %s1477_s16 = sphi %s1515_s16, %s1826_s16   ;;  %s1473_s15 = sphi %s1513_s15, %s1825_s15  }
   0x4   : > { %s1536_s21 = sadd.s32 1, %s1485_s18   ;;  %s119_s22 = sadd.s32 1, %s1481_s17 }
   0x5   : > { %s116_s23 = ssub.s32 %s1485_s18, %s1536_s21  ;;  %p129_p0 = scmp.ne.s32.totalorder %s1481_s17, %s1477_s16 }
   0x6   : > { %p117_p1 = scmp.eq.s32.totalorder %s116_s23, 0  ;;  %p130_p2 = scmp.eq.s32.totalorder %s1076_s19, 1 }
   0x7   : > { %p135_p3 = scmp.ne.s32.totalorder %s1477_s16, %s1473_s15  ;;  %p136_p4 = scmp.eq.s32.totalorder %s1077_s20, 1 }
   0x8   : > { %s1546_s24 = scalar_select %p117_p1, %s1481_s17, %s119_s22  }
   0x9   : > { %p1548_p5 = por %p130_p2, %p129_p0  ;;  %p1552_p6 = por %p136_p4, %p135_p3 }
   0xa   : > { %p1080_p7 = scmp.ge.s32.totalorder %s1485_s18, 1  ;;  %p169_p8 = scmp.lt.s32.totalorder %s1485_s18, 3 }
   0xc   : > { %p170_p9 = pnand %p1080_p7, %p169_p8 }
   0xd   : > { %s1561_s29 = sshll.u32 (!%p170_p9), %s1076_s19, 5  ;;  %s1487_s28 = smov (!%p170_p9), [#allocation2]  }
   0xe   : > { %173 = sbr.rel (%p170_p9) target bundleno = 342 (0x156), region = 32  ;;  %p201_p10 = scmp.lt.s32.totalorder (!%p170_p9), %s1561_s29, 63 }
   0xf   : > { %s1783_s22 = scalar_lea.hbm (!%p170_p9), %s1822_s4, %s1561_s29  ;;  %s1429_s30 = sshll.u32 (!%p170_p9), %s1487_s28, 4  ;;  %s1430_s30 = int_to_ptr.vmem [resolvable:$false] %s1429_s30 }
  0x10   : > { %s1431_s5 = scalar_lea.vmem (!%p170_p9), %s1430_s30, 64 }
  0x13   : > { %v1401_v0 = vld [vmem:[%s1819_s1 + $0x38] sm:$0xff]   ;;  %v1402_v1 = vld [vmem:[%s1819_s1 + $0x30] sm:$0xff]   ;;  %s1568_s6 = scalar_select %p201_p10, %s1561_s29, 63  ;;  %v1403_v2 = vld [vmem:[%s1819_s1 + $0x28] sm:$0xff]  }
  0x14   : > { %1298 = vmatprep.subr.bf16.mxu0 %v1401_v0  ;;  %1346 = vmatprep.subr.bf16.mxu1 %v1401_v0  ;;  %v1404_v3 = vld [vmem:[%s1819_s1 + $0x20] sm:$0xff]   ;;  %v1405_v5 = vld [vmem:[%s1819_s1 + $0x18] sm:$0xff]   ;;  %v1406_v7 = vld [vmem:[%s1819_s1 + $0x10] sm:$0xff]  }
  0x15   : > { %1299 = vmatpush3.bf16.msra.mxu0 %v1401_v0  ;;  %1354 = vmatpush3.bf16.msra.mxu1 %v1401_v0  ;;  %s1083_s9 = sshll.u32 %s1568_s6, 2  ;;  %v1407_v8 = vld [vmem:[%s1819_s1 + $0x8] sm:$0xff]   ;;  %v1408_v9 = vld [vmem:[%s1819_s1] sm:$0xff]   ;;  %s197_s6 = sand.u32 1, %s1477_s16  }
  0x16   : > { %1300 = vmatprep.subr.bf16.mxu0 %v1402_v1  ;;  %1347 = vmatprep.subr.bf16.mxu1 %v1402_v1  ;;  %s1579_s12 = scalar_lea.vmem %s1818_s0, %s1083_s9  ;;  %v1615_v24 = vld [vmem:[%s1820_s2] ss:$0 sm:$0xff]  ;;  %s976_s23 = scalar_lea.sflag [#allocation3], %s197_s6 }
  0x17   : > { %v1409_v4 = vld [vmem:[%s1579_s12] sm:$0xff]   ;;  %v1410_v10 = vld [vmem:[%s1579_s12 + $0x8] sm:$0xff]   ;;  %v1411_v12 = vld [vmem:[%s1579_s12 + $0x10] sm:$0xff]  }
  0x18   : > { %1314 = vmatprep.mubr.bf16.mxu0 %v1409_v4  ;;  %v1416_v6 = vld [vmem:[%s1579_s12 + $0x40] sm:$0xff]   ;;  %v1418_v11 = vld [vmem:[%s1579_s12 + $0x48] sm:$0xff]   ;;  %v1419_v13 = vld [vmem:[%s1579_s12 + $0x50] sm:$0xff]  }
  0x19   : > { %1301 = vmatpush3.bf16.msra.mxu0 %v1402_v1  ;;  %1355 = vmatpush3.bf16.msra.mxu1 %v1402_v1  ;;  %v1412_v14 = vld [vmem:[%s1579_s12 + $0x18] sm:$0xff]   ;;  %v1413_v16 = vld [vmem:[%s1579_s12 + $0x20] sm:$0xff]   ;;  %v1414_v18 = vld [vmem:[%s1579_s12 + $0x28] sm:$0xff]  }
  0x1a   : > { %1302 = vmatprep.subr.bf16.mxu0 %v1403_v2  ;;  %1348 = vmatprep.subr.bf16.mxu1 %v1403_v2  ;;  %v1420_v15 = vld [vmem:[%s1579_s12 + $0x58] sm:$0xff]   ;;  %v1421_v17 = vld [vmem:[%s1579_s12 + $0x60] sm:$0xff]   ;;  %v1422_v19 = vld [vmem:[%s1579_s12 + $0x68] sm:$0xff]  }
  0x1b   : > { %1330 = vmatprep.mubr.bf16.mxu1 %v1416_v6  ;;  %v1415_v20 = vld [vmem:[%s1579_s12 + $0x30] sm:$0xff]   ;;  %v1417_v22 = vld [vmem:[%s1579_s12 + $0x38] sm:$0xff]  }
  0x1c   : > { %v1423_v21 = vld [vmem:[%s1579_s12 + $0x70] sm:$0xff]   ;;  %v1424_v23 = vld [vmem:[%s1579_s12 + $0x78] sm:$0xff]   ;;  %s1644_s12 = scalar_lea.vmem %s1821_s3, %s1083_s9  ;;  %s1081_s9 = sshll.u32 %s197_s6, 1 }
  0x1d   : > { %1303 = vmatpush3.bf16.msra.mxu0 %v1403_v2  ;;  %1356 = vmatpush3.bf16.msra.mxu1 %v1403_v2  ;;  %s199_s13 = scalar_lea.vmem [#allocation2], %s1081_s9 }
  0x1e   : > { %1304 = vmatprep.subr.bf16.mxu0 %v1404_v3  ;;  %1349 = vmatprep.subr.bf16.mxu1 %v1404_v3  ;;  %s993_s14 = sshll.u32 %s199_s13, 4  ;;  %s994_s14 = int_to_ptr.vmem [resolvable:$true] %s993_s14 }
  0x1f   : > { %s1425_s27 = scalar_lea.vmem %s994_s14, 32  ;;  %p1432_p0 = scmp.lt.s32.totalorder %s994_s14, %s1430_s30 }
  0x20   : > { %p1426_p11 = scmp.ne.s32.totalorder %s994_s14, %s1425_s27  ;;  %p1433_p1 = scmp.lt.s32.totalorder %s1431_s5, %s1425_s27 }
  0x21   : > { %1305 = vmatpush3.bf16.msra.mxu0 %v1404_v3  ;;  %1357 = vmatpush3.bf16.msra.mxu1 %v1404_v3 }
  0x22   : > { %1306 = vmatprep.subr.bf16.mxu0 %v1405_v5  ;;  %1350 = vmatprep.subr.bf16.mxu1 %v1405_v5  ;;  %p1427_p12 = pnand %p1426_p11, %p1548_p5  ;;  %p1434_p2 = por %p1433_p1, %p1432_p0 }
  0x24   : > { %p1428_p13 = pneg %p1427_p12 }
  0x25   : > { %1307 = vmatpush3.bf16.msra.mxu0 %v1405_v5  ;;  %1358 = vmatpush3.bf16.msra.mxu1 %v1405_v5 }
  0x26   : > { %1308 = vmatprep.subr.bf16.mxu0 %v1406_v7  ;;  %1351 = vmatprep.subr.bf16.mxu1 %v1406_v7  ;;  %p1435_p3 = pnand %p1434_p2, %p1428_p13 }
  0x29   : > { %1309 = vmatpush3.bf16.msra.mxu0 %v1406_v7  ;;  %1359 = vmatpush3.bf16.msra.mxu1 %v1406_v7 }
  0x2a   : > { %1310 = vmatprep.subr.bf16.mxu0 %v1407_v8  ;;  %1352 = vmatprep.subr.bf16.mxu1 %v1407_v8 }
  0x2d   : > { %1311 = vmatpush3.bf16.msra.mxu0 %v1407_v8  ;;  %1360 = vmatpush3.bf16.msra.mxu1 %v1407_v8 }
  0x2e   : > { %1312 = vmatprep.subr.bf16.mxu0 %v1408_v9  ;;  %1353 = vmatprep.subr.bf16.mxu1 %v1408_v9 }
  0x31   : > { %1313 = vmatpush3.bf16.msra.mxu0 %v1408_v9  ;;  %1361 = vmatpush3.bf16.msra.mxu1 %v1408_v9 }
  0x34   : > { %1315 = vmatmul.mubr.bf16.vlgmr.msra.gmra.mxu0 %v1410_v10  ;;  %1331 = vmatmul.mubr.bf16.vlgmr.msra.gmra.mxu1 %v1418_v11 }
  0x35   : > { %1318 = vmatprep.mubr.bf16.mxu0 %v1411_v12  ;;  %1334 = vmatprep.mubr.bf16.mxu1 %v1419_v13 }
  0x3c   : > { %1319 = vmatmul.mubr.bf16.gmra.mxu0 %v1412_v14  ;;  %1335 = vmatmul.mubr.bf16.gmra.mxu1 %v1420_v15 }
  0x3d   : > { %1322 = vmatprep.mubr.bf16.mxu0 %v1413_v16  ;;  %1338 = vmatprep.mubr.bf16.mxu1 %v1421_v17 }
  0x44   : > { %1323 = vmatmul.mubr.bf16.gmra.mxu0 %v1414_v18  ;;  %1339 = vmatmul.mubr.bf16.gmra.mxu1 %v1422_v19 }
  0x45   : > { %1326 = vmatprep.mubr.bf16.mxu0 %v1415_v20  ;;  %1342 = vmatprep.mubr.bf16.mxu1 %v1423_v21 }
  0x4c   : > { %1327 = vmatmul.mubr.bf16.gmra.mxu0 %v1417_v22  ;;  %1343 = vmatmul.mubr.bf16.gmra.mxu1 %v1424_v23 }
  0xf4   : > { %v1316_v25 = vpop.f32.mrf.mxu0  ;;  %v1617_v26 = vpop.f32.mrf.mxu1 }
  0xf5   : > { %v684_v27 = vadd.f32 %v1316_v25, %v1615_v24  ;;  %v700_v28 = vadd.f32 %v1617_v26, %v1615_v24  ;;  %v605_v36 = vmul.f32 %v1316_v25, %v1316_v25 }
  0xf6   : > { %v439_v29 = vpop.f32.mrf.mxu0  ;;  %v1622_v30 = vpop.f32.mrf.mxu1 }
  0xf7   : > { %vm716_vm0 = vcmp.ge.f32.partialorder %v684_v27, 0.0  ;;  %v748_v31 = vmul.f32 0.2, %v684_v27  ;;  %v682_v32 = vadd.f32 %v1615_v24, %v439_v29  ;;  %v764_v34 = vmul.f32 0.2, %v700_v28 }
  0xf8   : > { %v1317_v33 = vpop.f32.mrf.mxu0  ;;  %v1625_v35 = vpop.f32.mrf.mxu1  ;;  %v603_v37 = vmul.f32 %v439_v29, %v439_v29  ;;  %vm732_vm1 = vcmp.ge.f32.partialorder %v700_v28, 0.0  ;;  %v1630_v42 = vadd.f32 %v1615_v24, %v1622_v30 }
  0xf9   : > { %v780_v38 = vsel %vm716_vm0, %v684_v27, %v748_v31  ;;  %v746_v39 = vmul.f32 0.2, %v682_v32  ;;  %v685_v40 = vadd.f32 %v1317_v33, %v1615_v24  ;;  %vm714_vm2 = vcmp.ge.f32.partialorder %v682_v32, 0.0 }
  0xfa   : > { %v442_v41 = vpop.f32.mrf.mxu0  ;;  %v1632_v43 = vpop.f32.mrf.mxu1  ;;  %v606_v47 = vmul.f32 %v1317_v33, %v1317_v33  ;;  %v1635_v50 = vsel %vm732_vm1, %v700_v28, %v764_v34  ;;  %v1649_v59 = vadd.f32 %v1625_v35, %v1615_v24  ;;  %v1652_v3 = vmul.f32 0.2, %v1630_v42 }
  0xfb   : > { %v566_v44 = vadd.f32 %v442_v41, %v439_v29  ;;  %v604_v45 = vmul.f32 %v442_v41, %v442_v41  ;;  %v683_v46 = vadd.f32 %v1615_v24, %v442_v41  ;;  %vm717_vm3 = vcmp.ge.f32.partialorder %v685_v40, 0.0 }
  0xfc   : > { %v749_v48 = vmul.f32 0.2, %v685_v40  ;;  %v1320_v49 = vpop.f32.mrf.mxu0  ;;  %v1637_v51 = vpop.f32.mrf.mxu1  ;;  %v778_v55 = vsel %vm714_vm2, %v682_v32, %v746_v39  ;;  %vm733_vm6 = vcmp.ge.f32.partialorder %v1649_v59, 0.0  ;;  %vm730_vm10 = vcmp.ge.f32.partialorder %v1630_v42, 0.0 }
  0xfd   : > { %v567_v52 = vadd.f32 %v1316_v25, %v566_v44  ;;  %v635_v53 = vadd.f32 %v604_v45, %v603_v37  ;;  %vm715_vm4 = vcmp.ge.f32.partialorder %v683_v46, 0.0  ;;  %v747_v54 = vmul.f32 0.2, %v683_v46 }
  0xfe   : > { %v781_v56 = vsel %vm717_vm3, %v685_v40, %v749_v48  ;;  %v688_v57 = vadd.f32 %v1320_v49, %v1615_v24  ;;  %v455_v58 = vpop.f32.mrf.mxu0  ;;  %v1654_v4 = vpop.f32.mrf.mxu1  ;;  %v609_v9 = vmul.f32 %v1320_v49, %v1320_v49  ;;  %v765_v25 = vmul.f32 0.2, %v1649_v59 }
  0xff   : > { %v1187_v60 = vpack.c.bf16 %v781_v56, %v780_v38  ;;  %v636_v61 = vadd.f32 %v635_v53, %v605_v36  ;;  %v779_v62 = vsel %vm715_vm4, %v683_v46, %v747_v54  ;;  %v568_v63 = vadd.f32 %v1317_v33, %v567_v52 }
 0x100   : > { %v1182_v0 = vpack.c.bf16 %v779_v62, %v778_v55  ;;  %vm720_vm5 = vcmp.ge.f32.partialorder %v688_v57, 0.0  ;;  %v752_v1 = vmul.f32 0.2, %v688_v57  ;;  %v1321_v2 = vpop.f32.mrf.mxu0  ;;  %v607_v6 = vmul.f32 %v455_v58, %v455_v58  ;;  %v1662_v21 = vpop.f32.mrf.mxu1 }
 0x101   : > { %1259 = vst [vmem:[%s1644_s12 + $0x8] sm:$0xff] %v1187_v60   ;;  %v569_v5 = vadd.f32 %v568_v63, %v455_v58  ;;  %v637_v7 = vadd.f32 %v636_v61, %v606_v47  ;;  %v686_v8 = vadd.f32 %v1615_v24, %v455_v58  ;;  %v610_v11 = vmul.f32 %v1321_v2, %v1321_v2 }
 0x102   : > { %1183 = vst [vmem:[%s1644_s12] sm:$0xff] %v1182_v0   ;;  %v784_v10 = vsel %vm720_vm5, %v688_v57, %v752_v1  ;;  %v689_v12 = vadd.f32 %v1321_v2, %v1615_v24  ;;  %v458_v13 = vpop.f32.mrf.mxu0  ;;  %v1668_v41 = vpop.f32.mrf.mxu1  ;;  %v797_v58 = vsel %vm733_vm6, %v1649_v59, %v765_v25 }
 0x103   : > { %v638_v14 = vadd.f32 %v637_v7, %v607_v6  ;;  %v750_v15 = vmul.f32 0.2, %v686_v8  ;;  %v570_v16 = vadd.f32 %v569_v5, %v458_v13  ;;  %v608_v18 = vmul.f32 %v458_v13, %v458_v13 }
 0x104   : > { %vm721_vm7 = vcmp.ge.f32.partialorder %v689_v12, 0.0  ;;  %v753_v17 = vmul.f32 0.2, %v689_v12  ;;  %v687_v19 = vadd.f32 %v1615_v24, %v458_v13  ;;  %v1324_v20 = vpop.f32.mrf.mxu0  ;;  %vm718_vm8 = vcmp.ge.f32.partialorder %v686_v8, 0.0  ;;  %v1677_v63 = vpop.f32.mrf.mxu1 }
 0x105   : > { %v571_v22 = vadd.f32 %v1320_v49, %v570_v16  ;;  %v692_v23 = vadd.f32 %v1324_v20, %v1615_v24  ;;  %v639_v28 = vadd.f32 %v638_v14, %v608_v18  ;;  %v782_v36 = vsel %vm718_vm8, %v686_v8, %v750_v15 }
 0x106   : > { %v785_v27 = vsel %vm721_vm7, %v689_v12, %v753_v17  ;;  %vm719_vm9 = vcmp.ge.f32.partialorder %v687_v19, 0.0  ;;  %v751_v29 = vmul.f32 0.2, %v687_v19  ;;  %v471_v31 = vpop.f32.mrf.mxu0  ;;  %v613_v45 = vmul.f32 %v1324_v20, %v1324_v20  ;;  %v1682_v17 = vpop.f32.mrf.mxu1 }
 0x107   : > { %v1197_v32 = vpack.c.bf16 %v785_v27, %v784_v10  ;;  %vm724_vm11 = vcmp.ge.f32.partialorder %v692_v23, 0.0  ;;  %v756_v33 = vmul.f32 0.2, %v692_v23  ;;  %v572_v34 = vadd.f32 %v1321_v2, %v571_v22 }
 0x108   : > { %v640_v37 = vadd.f32 %v639_v28, %v609_v9  ;;  %v783_v38 = vsel %vm719_vm9, %v687_v19, %v751_v29  ;;  %v690_v39 = vadd.f32 %v1615_v24, %v471_v31  ;;  %v1325_v40 = vpop.f32.mrf.mxu0  ;;  %v611_v47 = vmul.f32 %v471_v31, %v471_v31 }
 0x109   : > { %1261 = vst [vmem:[%s1644_s12 + $0x18] sm:$0xff] %v1197_v32   ;;  %v1192_v44 = vpack.c.bf16 %v783_v38, %v782_v36  ;;  %v573_v46 = vadd.f32 %v572_v34, %v471_v31  ;;  %v788_v48 = vsel %vm724_vm11, %v692_v23, %v756_v33  ;;  %v693_v53 = vadd.f32 %v1325_v40, %v1615_v24 }
 0x10a   : > { %v641_v49 = vadd.f32 %v640_v37, %v610_v11  ;;  %v754_v52 = vmul.f32 0.2, %v690_v39  ;;  %v474_v54 = vpop.f32.mrf.mxu0  ;;  %vm722_vm12 = vcmp.ge.f32.partialorder %v690_v39, 0.0  ;;  %v614_v0 = vmul.f32 %v1325_v40, %v1325_v40 }
 0x10b   : > { %1260 = vst [vmem:[%s1644_s12 + $0x10] sm:$0xff] %v1192_v44   ;;  %v574_v55 = vadd.f32 %v573_v46, %v474_v54  ;;  %v612_v56 = vmul.f32 %v474_v54, %v474_v54  ;;  %v691_v57 = vadd.f32 %v1615_v24, %v474_v54  ;;  %vm725_vm13 = vcmp.ge.f32.partialorder %v693_v53, 0.0 }
 0x10c   : > { %v642_v60 = vadd.f32 %v641_v49, %v611_v47  ;;  %v757_v61 = vmul.f32 0.2, %v693_v53  ;;  %v1328_v62 = vpop.f32.mrf.mxu0  ;;  %v1227_v59 = vpack.c.bf16 %v797_v58, %v1635_v50  ;;  %v786_v9 = vsel %vm722_vm12, %v690_v39, %v754_v52 }
 0x10d   : > { %v575_v1 = vadd.f32 %v1324_v20, %v574_v55  ;;  %vm723_vm14 = vcmp.ge.f32.partialorder %v691_v57, 0.0  ;;  %v755_v2 = vmul.f32 0.2, %v691_v57  ;;  %v696_v7 = vadd.f32 %v1328_v62, %v1615_v24 }
 0x10e   : > { %v789_v5 = vsel %vm725_vm13, %v693_v53, %v757_v61  ;;  %v643_v6 = vadd.f32 %v642_v60, %v612_v56  ;;  %v487_v8 = vpop.f32.mrf.mxu0  ;;  %1267 = vst [vmem:[%s1644_s12 + $0x48] sm:$0xff] %v1227_v59   ;;  %v794_v50 = vsel %vm730_vm10, %v1630_v42, %v1652_v3  ;;  %v617_v22 = vmul.f32 %v1328_v62, %v1328_v62  ;;  %v1696_v3 = vpop.f32.mrf.mxu1 }
 0x10f   : > { %v1207_v10 = vpack.c.bf16 %v789_v5, %v788_v48  ;;  %v787_v11 = vsel %vm723_vm14, %v691_v57, %v755_v2  ;;  %v576_v12 = vadd.f32 %v1325_v40, %v575_v1  ;;  %vm728_vm15 = vcmp.ge.f32.partialorder %v696_v7, 0.0 }
 0x110   : > { %v644_v13 = vadd.f32 %v643_v6, %v613_v45  ;;  %v1202_v14 = vpack.c.bf16 %v787_v11, %v786_v9  ;;  %v760_v15 = vmul.f32 0.2, %v696_v7  ;;  %v1329_v16 = vpop.f32.mrf.mxu0  ;;  %v694_v19 = vadd.f32 %v1615_v24, %v487_v8  ;;  %v1703_v55 = vpop.f32.mrf.mxu1 }
 0x111   : > { %1263 = vst [vmem:[%s1644_s12 + $0x28] sm:$0xff] %v1207_v10   ;;  %v577_v18 = vadd.f32 %v576_v12, %v487_v8  ;;  %v697_v20 = vadd.f32 %v1329_v16, %v1615_v24  ;;  %v615_v23 = vmul.f32 %v487_v8, %v487_v8  ;;  %v699_v28 = vadd.f32 %v1615_v24, %v1632_v43 }
 0x112   : > { %1262 = vst [vmem:[%s1644_s12 + $0x20] sm:$0xff] %v1202_v14   ;;  %v645_v25 = vadd.f32 %v644_v13, %v614_v0  ;;  %v490_v27 = vpop.f32.mrf.mxu0  ;;  %v792_v29 = vsel %vm728_vm15, %v696_v7, %v760_v15  ;;  %vm726_vm0 = vcmp.ge.f32.partialorder %v694_v19, 0.0  ;;  %v758_v36 = vmul.f32 0.2, %v694_v19  ;;  %v1720_v59 = vpop.f32.mrf.mxu1 }
 0x113   : > { %vm729_vm1 = vcmp.ge.f32.partialorder %v697_v20, 0.0  ;;  %v761_v31 = vmul.f32 0.2, %v697_v20  ;;  %v578_v33 = vadd.f32 %v577_v18, %v490_v27  ;;  %v616_v34 = vmul.f32 %v490_v27, %v490_v27 }
 0x114   : > { %v646_v32 = vadd.f32 %v645_v25, %v615_v23  ;;  %v695_v42 = vadd.f32 %v1615_v24, %v490_v27  ;;  %vm731_vm2 = vcmp.ge.f32.partialorder %v699_v28, 0.0  ;;  %v763_v38 = vmul.f32 0.2, %v699_v28 }
 0x115   : > { %v793_v37 = vsel %vm729_vm1, %v697_v20, %v761_v31  ;;  %v579_v40 = vadd.f32 %v1328_v62, %v578_v33  ;;  %v619_v45 = vmul.f32 %v1622_v30, %v1622_v30  ;;  %v704_v48 = vadd.f32 %v1637_v51, %v1615_v24 }
 0x116   : > { %v1217_v39 = vpack.c.bf16 %v793_v37, %v792_v29  ;;  %v647_v44 = vadd.f32 %v646_v32, %v616_v34  ;;  %vm727_vm3 = vcmp.ge.f32.partialorder %v695_v42, 0.0  ;;  %v759_v46 = vmul.f32 0.2, %v695_v42 }
 0x117   : > { %v795_v47 = vsel %vm731_vm2, %v699_v28, %v763_v38  ;;  %v618_v49 = vmul.f32 %v1329_v16, %v1329_v16  ;;  %v580_v52 = vadd.f32 %v1329_v16, %v579_v40  ;;  %v790_v56 = vsel %vm726_vm0, %v694_v19, %v758_v36 }
 0x118   : > { %1265 = vst [vmem:[%s1644_s12 + $0x38] sm:$0xff] %v1217_v39   ;;  %v648_v53 = vadd.f32 %v647_v44, %v617_v22  ;;  %v1222_v54 = vpack.c.bf16 %v795_v47, %v794_v50  ;;  %v791_v57 = vsel %vm727_vm3, %v695_v42, %v759_v46  ;;  %v768_v58 = vmul.f32 0.2, %v704_v48  ;;  %v1730_v22 = vpop.f32.mrf.mxu1 }
 0x119   : > { %v702_v60 = vadd.f32 %v1615_v24, %v1654_v4  ;;  %v1212_v62 = vpack.c.bf16 %v791_v57, %v790_v56  ;;  %v581_v0 = vadd.f32 %v580_v52, %v1622_v30  ;;  %vm736_vm4 = vcmp.ge.f32.partialorder %v704_v48, 0.0 }
 0x11a   : > { %v649_v61 = vadd.f32 %v648_v53, %v618_v49  ;;  %1266 = vst [vmem:[%s1644_s12 + $0x40] sm:$0xff] %v1222_v54   ;;  %v621_v1 = vmul.f32 %v1617_v26, %v1617_v26  ;;  %v705_v5 = vadd.f32 %v1662_v21, %v1615_v24  ;;  %v620_v7 = vmul.f32 %v1632_v43, %v1632_v43  ;;  %v1345_v38 = vpop.f32.mrf.mxu1 }
 0x11b   : > { %vm734_vm5 = vcmp.ge.f32.partialorder %v702_v60, 0.0  ;;  %v766_v2 = vmul.f32 0.2, %v702_v60  ;;  %1264 = vst [vmem:[%s1644_s12 + $0x30] sm:$0xff] %v1212_v62   ;;  %v582_v6 = vadd.f32 %v581_v0, %v1632_v43  ;;  %v703_v30 = vadd.f32 %v1615_v24, %v1668_v41 }
 0x11c   : > { %v650_v8 = vadd.f32 %v649_v61, %v619_v45  ;;  %v800_v9 = vsel %vm736_vm4, %v704_v48, %v768_v58  ;;  %vm737_vm6 = vcmp.ge.f32.partialorder %v705_v5, 0.0  ;;  %v769_v11 = vmul.f32 0.2, %v705_v5 }
 0x11d   : > { %v798_v10 = vsel %vm734_vm5, %v702_v60, %v766_v2  ;;  %v583_v12 = vadd.f32 %v1617_v26, %v582_v6  ;;  %vm735_vm7 = vcmp.ge.f32.partialorder %v703_v30, 0.0  ;;  %v767_v14 = vmul.f32 0.2, %v703_v30 }
 0x11e   : > { %v651_v13 = vadd.f32 %v650_v8, %v620_v7  ;;  %v622_v15 = vmul.f32 %v1625_v35, %v1625_v35  ;;  %v801_v43 = vsel %vm737_vm6, %v705_v5, %v769_v11  ;;  %v708_v16 = vadd.f32 %v1677_v63, %v1615_v24 }
 0x11f   : > { %v706_v18 = vadd.f32 %v1615_v24, %v1682_v17  ;;  %v584_v50 = vadd.f32 %v1625_v35, %v583_v12  ;;  %v1237_v20 = vpack.c.bf16 %v801_v43, %v800_v9  ;;  %v799_v26 = vsel %vm735_vm7, %v703_v30, %v767_v14 }
 0x120   : > { %v652_v19 = vadd.f32 %v651_v13, %v621_v1  ;;  %v1232_v23 = vpack.c.bf16 %v799_v26, %v798_v10  ;;  %vm740_vm8 = vcmp.ge.f32.partialorder %v708_v16, 0.0  ;;  %v772_v25 = vmul.f32 0.2, %v708_v16 }
 0x121   : > { %vm738_vm9 = vcmp.ge.f32.partialorder %v706_v18, 0.0  ;;  %v585_v27 = vadd.f32 %v584_v50, %v1654_v4  ;;  %v623_v28 = vmul.f32 %v1654_v4, %v1654_v4  ;;  %1269 = vst [vmem:[%s1644_s12 + $0x58] sm:$0xff] %v1237_v20   ;;  %v770_v31 = vmul.f32 0.2, %v706_v18 }
 0x122   : > { %v653_v29 = vadd.f32 %v652_v19, %v622_v15  ;;  %v624_v32 = vmul.f32 %v1668_v41, %v1668_v41  ;;  %1268 = vst [vmem:[%s1644_s12 + $0x50] sm:$0xff] %v1232_v23   ;;  %v709_v35 = vadd.f32 %v1696_v3, %v1615_v24  ;;  %v707_v33 = vadd.f32 %v1615_v24, %v1703_v55 }
 0x123   : > { %v586_v42 = vadd.f32 %v585_v27, %v1668_v41  ;;  %v804_v36 = vsel %vm740_vm8, %v708_v16, %v772_v25  ;;  %v802_v37 = vsel %vm738_vm9, %v706_v18, %v770_v31  ;;  %v625_v40 = vmul.f32 %v1637_v51, %v1637_v51 }
 0x124   : > { %v654_v34 = vadd.f32 %v653_v29, %v623_v28  ;;  %vm741_vm10 = vcmp.ge.f32.partialorder %v709_v35, 0.0  ;;  %v773_v4 = vmul.f32 0.2, %v709_v35  ;;  %vm739_vm11 = vcmp.ge.f32.partialorder %v707_v33, 0.0 }
 0x125   : > { %v771_v39 = vmul.f32 0.2, %v707_v33  ;;  %v587_v44 = vadd.f32 %v1637_v51, %v586_v42  ;;  %v712_v46 = vadd.f32 %v1720_v59, %v1615_v24  ;;  %v626_v41 = vmul.f32 %v1662_v21, %v1662_v21  ;;  %v554_v51 = vpop.f32.mrf.mxu1 }
 0x126   : > { %v655_v45 = vadd.f32 %v654_v34, %v624_v32  ;;  %v805_v47 = vsel %vm741_vm10, %v709_v35, %v773_v4  ;;  %v710_v49 = vadd.f32 %v1615_v24, %v1730_v22  ;;  %v627_v57 = vmul.f32 %v1682_v17, %v1682_v17 }
 0x127   : > { %v803_v48 = vsel %vm739_vm11, %v707_v33, %v771_v39  ;;  %v588_v53 = vadd.f32 %v1662_v21, %v587_v44  ;;  %v1247_v54 = vpack.c.bf16 %v805_v47, %v804_v36  ;;  %vm744_vm12 = vcmp.ge.f32.partialorder %v712_v46, 0.0 }
 0x128   : > { %v656_v52 = vadd.f32 %v655_v45, %v625_v40  ;;  %v1242_v56 = vpack.c.bf16 %v803_v48, %v802_v37  ;;  %v776_v58 = vmul.f32 0.2, %v712_v46  ;;  %v774_v60 = vmul.f32 0.2, %v710_v49 }
 0x129   : > { %v589_v61 = vadd.f32 %v588_v53, %v1682_v17  ;;  %1271 = vst [vmem:[%s1644_s12 + $0x68] sm:$0xff] %v1247_v54   ;;  %vm742_vm13 = vcmp.ge.f32.partialorder %v710_v49, 0.0  ;;  %v713_v0 = vadd.f32 %v1345_v38, %v1615_v24  ;;  %v628_v21 = vmul.f32 %v1703_v55, %v1703_v55 }
 0x12a   : > { %v657_v62 = vadd.f32 %v656_v52, %v626_v41  ;;  %1270 = vst [vmem:[%s1644_s12 + $0x60] sm:$0xff] %v1242_v56   ;;  %v808_v1 = vsel %vm744_vm12, %v712_v46, %v776_v58  ;;  %v711_v2 = vadd.f32 %v1615_v24, %v554_v51  ;;  %v806_v8 = vsel %vm742_vm13, %v710_v49, %v774_v60 }
 0x12b   : > { %v590_v6 = vadd.f32 %v589_v61, %v1703_v55  ;;  %vm745_vm14 = vcmp.ge.f32.partialorder %v713_v0, 0.0  ;;  %v777_v7 = vmul.f32 0.2, %v713_v0  ;;  %v629_v30 = vmul.f32 %v1677_v63, %v1677_v63 }
 0x12c   : > { %v658_v5 = vadd.f32 %v657_v62, %v627_v57  ;;  %vm743_vm15 = vcmp.ge.f32.partialorder %v711_v2, 0.0  ;;  %v775_v17 = vmul.f32 0.2, %v711_v2  ;;  %v630_v24 = vmul.f32 %v1696_v3, %v1696_v3 }
 0x12d   : > { %v591_v9 = vadd.f32 %v1677_v63, %v590_v6  ;;  %v809_v11 = vsel %vm745_vm14, %v713_v0, %v777_v7  ;;  %v631_v16 = vmul.f32 %v1730_v22, %v1730_v22  ;;  %v632_v50 = vmul.f32 %v554_v51, %v554_v51 }
 0x12e   : > { %v659_v10 = vadd.f32 %v658_v5, %v628_v21  ;;  %v1257_v12 = vpack.c.bf16 %v809_v11, %v808_v1  ;;  %v807_v13 = vsel %vm743_vm15, %v711_v2, %v775_v17  ;;  %v633_v20 = vmul.f32 %v1720_v59, %v1720_v59 }
 0x12f   : > { %v592_v14 = vadd.f32 %v1696_v3, %v591_v9  ;;  %v1252_v15 = vpack.c.bf16 %v807_v13, %v806_v8  ;;  %v634_v3 = vmul.f32 %v1345_v38, %v1345_v38  ;;  %vm672_vm0 = vcmask 1040384  }
 0x130   : > { %v660_v55 = vadd.f32 %v659_v10, %v629_v30  ;;  %1273 = vst [vmem:[%s1644_s12 + $0x78] sm:$0xff] %v1257_v12  }
 0x131   : > { %v593_v43 = vadd.f32 %v592_v14, %v1730_v22  ;;  %1272 = vst [vmem:[%s1644_s12 + $0x70] sm:$0xff] %v1252_v15  }
 0x132   : > { %v661_v18 = vadd.f32 %v660_v55, %v630_v24 }
 0x133   : > { %v594_v19 = vadd.f32 %v593_v43, %v554_v51 }
 0x134   : > { %v662_v63 = vadd.f32 %v661_v18, %v631_v16 }
 0x135   : > { %v595_v26 = vadd.f32 %v1720_v59, %v594_v19 }
 0x136   : > { %v663_v23 = vadd.f32 %v662_v63, %v632_v50 }
 0x137   : > { %v596_v25 = vadd.f32 %v1345_v38, %v595_v26 }
 0x138   : > { %v664_v27 = vadd.f32 %v663_v23, %v633_v20 }
 0x139   : > { %v597_v28 = vrot.slane %v596_v25, 4 }
 0x13a   : > { %v665_v29 = vadd.f32 %v664_v27, %v634_v3 }
 0x13b   : > { %v598_v31 = vadd.f32 %v597_v28, %v596_v25 }
 0x13c   : > { %v666_v22 = vrot.slane %v665_v29, 4 }
 0x13d   : > { %v599_v32 = vrot.slane %v598_v31, 2 }
 0x13e   : > { %v667_v35 = vadd.f32 %v666_v22, %v665_v29 }
 0x13f   : > { %v600_v33 = vadd.f32 %v599_v32, %v598_v31 }
 0x140   : > { %v668_v34 = vrot.slane %v667_v35, 2 }
 0x141   : > { %v601_v42 = vrot.slane %v600_v33, 1 }
 0x142   : > { %v669_v36 = vadd.f32 %v668_v34, %v667_v35 }
 0x143   : > { %v602_v59 = vadd.f32 %v601_v42, %v600_v33 }
 0x144   : > { %v670_v37 = vrot.slane %v669_v36, 1 }
 0x146   : > { %v671_v38 = vadd.f32 %v670_v37, %v669_v36 }
 0x148   : > { %v673_v4 = vsel %vm672_vm0, %v602_v59, %v671_v38 }
 0x149   : > { %674 = vst [vmem:[%s199_s13] sm:$0x3] %v673_v4 }
 0x14a   : > { %1438 = shalt.err (!%p1435_p3)
}
 0x14b   : > { %s1439_s29 = scalar_lea.hbm %s1783_s22, 32  ;;  %s1443_s10 = scalar_lea.hbm %s1822_s4, 64 }
 0x14c   : > { %p1440_p4 = scmp.ne.s32.totalorder %s1783_s22, %s1439_s29  ;;  %p1444_p9 = scmp.lt.s32.totalorder %s1783_s22, %s1822_s4 }
 0x14d   : > { %p1445_p10 = scmp.lt.s32.totalorder %s1443_s10, %s1439_s29 }
 0x14e   : > { %p1441_p7 = pnand %p1440_p4, %p1548_p5 }
 0x14f   : > { %p1446_p11 = por %p1445_p10, %p1444_p9 }
 0x150   : > { %p1442_p8 = pneg %p1441_p7 }
 0x152   : > { %p1447_p12 = pnand %p1446_p11, %p1442_p8 }
 0x154   : > { %1450 = shalt.err (!%p1447_p12)
}
 0x155   : > { %1362 = dma.vmem_to_hbm [thread:$0]  (%p1548_p5), %s994_s14, 32, %s1783_s22, %s976_s23  }
 0x156 PF: > { %p1368_p13 = scmp.ge.s32.totalorder %s1485_s18, 2  ;;  %s1013_s6 = sand.u32 1, %s1473_s15  }
 0x157   : > { %s1014_s9 = scalar_lea.sflag [#allocation3], %s1013_s6 }
 0x158   : > { %p1365_p0 = pnand %p1368_p13, %p1552_p6 }
 0x15a   : > { %p1366_p1 = pneg %p1365_p0 }
 0x15c   : > { %1468 = dma.done.wait (%p1366_p1), %s1014_s9, 32  }
 0x15d   : > { %1470 = vsyncadd (%p1366_p1), %s1014_s9, 4294967264  ;;  %p15_p2 = scmp.ge.s32.totalorder %s1536_s21, 4   ;;  %s1825_s15 = smov %s1477_s16 }
 0x15e   : > { %s1826_s16 = smov %s1481_s17  ;;  %s1827_s17 = smov %s1546_s24 }
 0x15f   : > { %s1828_s18 = smov %s1536_s21  ;;  %17 = sbr.rel (!%p15_p2) target bundleno = 3 (0x3), region = 79 }
 0x164   :  { %1019 = vsyncpa [#allocation3], 1 }
 0x165   :  { %1021 = vsyncpa [#allocation3 + $0x1], 1 }

// kernel: _lambda_.7
= control target key start
LH: loop header
LB: loop body
LE: loop exit
PB: predicated region body
PF: predicated region fallthrough
CT: control target
= control target key end

     0   :  { %vm441_vm0 = vcmask 1040384   ;;  %s756_s1 = inlined_call_operand.vmem [shape: bf16[512,128], index: 1, kind: input, shape index: {}]   ;;  %s757_s2 = inlined_call_operand.vmem [shape: f32[1,128], index: 2, kind: input, shape index: {}]   ;;  %s758_s0 = inlined_call_operand.vmem [shape: bf16[32,512], index: 0, kind: input, shape index: {}]   ;;  %s759_s3 = inlined_call_operand.vmem [shape: f32[32,128], index: 3, kind: output, shape index: {0}]   ;;  %s760_s4 = inlined_call_operand.vmem [shape: f32[1,2,128], index: 4, kind: output, shape index: {1}]  }
   0x1   :  { %v552_v0 = vld [vmem:[%s756_s1 + $0x78] sm:$0xff]   ;;  %v556_v4 = vld [vmem:[%s756_s1 + $0x70] sm:$0xff]   ;;  %v560_v8 = vld [vmem:[%s756_s1 + $0x68] sm:$0xff]  }
   0x2   :  { %v553_v1 = vld [vmem:[%s756_s1 + $0xf8] sm:$0xff]   ;;  %496 = vmatprep.subr.bf16.mxu0 %v552_v0  ;;  %v557_v5 = vld [vmem:[%s756_s1 + $0xf0] sm:$0xff]   ;;  %v561_v9 = vld [vmem:[%s756_s1 + $0xe8] sm:$0xff]  }
   0x3   :  { %v554_v2 = vld [vmem:[%s756_s1 + $0x38] sm:$0xff]   ;;  %524 = vmatprep.subr.bf16.mxu1 %v553_v1  ;;  %v558_v6 = vld [vmem:[%s756_s1 + $0x30] sm:$0xff]   ;;  %v562_v10 = vld [vmem:[%s756_s1 + $0x28] sm:$0xff]  }
   0x4   :  { %v555_v3 = vld [vmem:[%s756_s1 + $0xb8] sm:$0xff]   ;;  %497 = vmatpush3.bf16.msra.mxu0 %v554_v2  ;;  %v559_v7 = vld [vmem:[%s756_s1 + $0xb0] sm:$0xff]   ;;  %v563_v11 = vld [vmem:[%s756_s1 + $0xa8] sm:$0xff]  }
   0x5   :  { %525 = vmatpush3.bf16.msra.mxu1 %v555_v3  ;;  %498 = vmatprep.subr.bf16.mxu0 %v556_v4  ;;  %v564_v12 = vld [vmem:[%s756_s1 + $0x60] sm:$0xff]   ;;  %v568_v16 = vld [vmem:[%s756_s1 + $0x58] sm:$0xff]   ;;  %v572_v20 = vld [vmem:[%s756_s1 + $0x50] sm:$0xff]  }
   0x6   :  { %526 = vmatprep.subr.bf16.mxu1 %v557_v5  ;;  %v565_v13 = vld [vmem:[%s756_s1 + $0xe0] sm:$0xff]   ;;  %v569_v17 = vld [vmem:[%s756_s1 + $0xd8] sm:$0xff]   ;;  %v573_v21 = vld [vmem:[%s756_s1 + $0xd0] sm:$0xff]  }
   0x7   :  { %v566_v14 = vld [vmem:[%s756_s1 + $0x20] sm:$0xff]   ;;  %v570_v18 = vld [vmem:[%s756_s1 + $0x18] sm:$0xff]   ;;  %v574_v22 = vld [vmem:[%s756_s1 + $0x10] sm:$0xff]  }
   0x8   :  { %499 = vmatpush3.bf16.msra.mxu0 %v558_v6  ;;  %v567_v15 = vld [vmem:[%s756_s1 + $0xa0] sm:$0xff]   ;;  %v571_v19 = vld [vmem:[%s756_s1 + $0x98] sm:$0xff]   ;;  %v575_v23 = vld [vmem:[%s756_s1 + $0x90] sm:$0xff]  }
   0x9   :  { %527 = vmatpush3.bf16.msra.mxu1 %v559_v7  ;;  %500 = vmatprep.subr.bf16.mxu0 %v560_v8  ;;  %v576_v24 = vld [vmem:[%s756_s1 + $0x48] sm:$0xff]   ;;  %v580_v28 = vld [vmem:[%s756_s1 + $0x40] sm:$0xff]  }
   0xa   :  { %528 = vmatprep.subr.bf16.mxu1 %v561_v9  ;;  %v577_v25 = vld [vmem:[%s756_s1 + $0xc8] sm:$0xff]   ;;  %v581_v29 = vld [vmem:[%s756_s1 + $0xc0] sm:$0xff]  }
   0xb   :  { %v578_v26 = vld [vmem:[%s756_s1 + $0x8] sm:$0xff]   ;;  %v582_v30 = vld [vmem:[%s756_s1] sm:$0xff]  }
   0xc   :  { %501 = vmatpush3.bf16.msra.mxu0 %v562_v10  ;;  %v579_v27 = vld [vmem:[%s756_s1 + $0x88] sm:$0xff]   ;;  %v583_v31 = vld [vmem:[%s756_s1 + $0x80] sm:$0xff]  }
   0xd   :  { %529 = vmatpush3.bf16.msra.mxu1 %v563_v11  ;;  %502 = vmatprep.subr.bf16.mxu0 %v564_v12  ;;  %v584_v32 = vld [vmem:[%s758_s0] ss:$16 sps:$4 sm:$0xff]   ;;  %v586_v33 = vld [vmem:[%s758_s0 + $0x4] ss:$16 sps:$4 sm:$0xff]   ;;  %v587_v34 = vld [vmem:[%s758_s0 + $0x8] ss:$16 sps:$4 sm:$0xff]  }
   0xe   :  { %530 = vmatprep.subr.bf16.mxu1 %v565_v13  ;;  %v589_v35 = vld [vmem:[%s758_s0 + $0xc] ss:$16 sps:$4 sm:$0xff]   ;;  %353 = vmatprep.mubr.bf16.mxu0 %v586_v33  ;;  %v590_v36 = vld [vmem:[%s758_s0 + $0x24] ss:$16 sps:$4 sm:$0xff]   ;;  %v594_v38 = vld [vmem:[%s758_s0 + $0x20] ss:$16 sps:$4 sm:$0xff]  }
   0xf   :  { %402 = vmatprep.mubr.bf16.mxu1 %v589_v35  ;;  %v592_v37 = vld [vmem:[%s758_s0 + $0x2c] ss:$16 sps:$4 sm:$0xff]   ;;  %v595_v39 = vld [vmem:[%s758_s0 + $0x28] ss:$16 sps:$4 sm:$0xff]  }
  0x10   :  { %503 = vmatpush3.bf16.msra.mxu0 %v566_v14 }
  0x11   :  { %531 = vmatpush3.bf16.msra.mxu1 %v567_v15  ;;  %504 = vmatprep.subr.bf16.mxu0 %v568_v16 }
  0x12   :  { %532 = vmatprep.subr.bf16.mxu1 %v569_v17 }
  0x14   :  { %505 = vmatpush3.bf16.msra.mxu0 %v570_v18 }
  0x15   :  { %533 = vmatpush3.bf16.msra.mxu1 %v571_v19  ;;  %506 = vmatprep.subr.bf16.mxu0 %v572_v20 }
  0x16   :  { %534 = vmatprep.subr.bf16.mxu1 %v573_v21 }
  0x18   :  { %507 = vmatpush3.bf16.msra.mxu0 %v574_v22 }
  0x19   :  { %535 = vmatpush3.bf16.msra.mxu1 %v575_v23  ;;  %508 = vmatprep.subr.bf16.mxu0 %v576_v24 }
  0x1a   :  { %536 = vmatprep.subr.bf16.mxu1 %v577_v25 }
  0x1c   :  { %509 = vmatpush3.bf16.msra.mxu0 %v578_v26 }
  0x1d   :  { %537 = vmatpush3.bf16.msra.mxu1 %v579_v27  ;;  %510 = vmatprep.subr.bf16.mxu0 %v580_v28 }
  0x1e   :  { %538 = vmatprep.subr.bf16.mxu1 %v581_v29 }
  0x20   :  { %511 = vmatpush3.bf16.msra.mxu0 %v582_v30 }
  0x21   :  { %539 = vmatpush3.bf16.msra.mxu1 %v583_v31 }
  0x23   :  { %354 = vmatmul.mubr.bf16.vlgmr.msra.gmra.mxu0 %v584_v32 }
  0x24   :  { %403 = vmatmul.mubr.bf16.vlgmr.msra.gmra.mxu1 %v587_v34  ;;  %361 = vmatprep.mubr.bf16.mxu0 %v590_v36 }
  0x25   :  { %410 = vmatprep.mubr.bf16.mxu1 %v592_v37 }
  0x2b   :  { %362 = vmatmul.mubr.bf16.gmra.mxu0 %v594_v38 }
  0x2c   :  { %411 = vmatmul.mubr.bf16.gmra.mxu1 %v595_v39 }
  0xe3   :  { %v512_v40 = vpop.f32.mrf.mxu0 }
  0xe4   :  { %v540_v41 = vpop.f32.mrf.mxu1 }
  0xe5   :  { %v513_v42 = vpop.f32.mrf.mxu0 }
  0xe6   :  { %v514_v43 = vadd.f32 %v513_v42, %v512_v40  ;;  %v541_v44 = vpop.f32.mrf.mxu1 }
  0xe7   :  { %v542_v45 = vadd.f32 %v541_v44, %v540_v41  ;;  %v515_v46 = vpop.f32.mrf.mxu0 }
  0xe8   :  { %v543_v47 = vpop.f32.mrf.mxu1 }
  0xe9   :  { %v405_v48 = vadd.f32 %v542_v45, %v514_v43  ;;  %v516_v49 = vpop.f32.mrf.mxu0 }
  0xea   :  { %v517_v50 = vadd.f32 %v516_v49, %v515_v46  ;;  %v544_v51 = vpop.f32.mrf.mxu1 }
  0xeb   :  { %444 = vst [vmem:[%s759_s3] sm:$0xff] %v405_v48  ;;  %v545_v52 = vadd.f32 %v544_v51, %v543_v47  ;;  %v518_v53 = vpop.f32.mrf.mxu0  ;;  %v428_v3 = vmul.f32 %v405_v48, %v405_v48 }
  0xec   :  { %v546_v54 = vpop.f32.mrf.mxu1 }
  0xed   :  { %v408_v55 = vadd.f32 %v545_v52, %v517_v50  ;;  %v519_v56 = vpop.f32.mrf.mxu0 }
  0xee   :  { %v520_v57 = vadd.f32 %v519_v56, %v518_v53  ;;  %v547_v58 = vpop.f32.mrf.mxu1 }
  0xef   :  { %445 = vst [vmem:[%s759_s3 + $0x8] sm:$0xff] %v408_v55  ;;  %v548_v59 = vadd.f32 %v547_v58, %v546_v54  ;;  %v521_v60 = vpop.f32.mrf.mxu0  ;;  %v429_v62 = vmul.f32 %v408_v55, %v408_v55  ;;  %v419_v4 = vadd.f32 %v408_v55, %v405_v48 }
  0xf0   :  { %v549_v61 = vpop.f32.mrf.mxu1 }
  0xf1   :  { %v413_v63 = vadd.f32 %v548_v59, %v520_v57  ;;  %v522_v0 = vpop.f32.mrf.mxu0  ;;  %v432_v7 = vadd.f32 %v429_v62, %v428_v3 }
  0xf2   :  { %v523_v1 = vadd.f32 %v522_v0, %v521_v60  ;;  %v550_v2 = vpop.f32.mrf.mxu1 }
  0xf3   :  { %v430_v5 = vmul.f32 %v413_v63, %v413_v63  ;;  %446 = vst [vmem:[%s759_s3 + $0x10] sm:$0xff] %v413_v63  ;;  %v551_v6 = vadd.f32 %v550_v2, %v549_v61  ;;  %v420_v8 = vadd.f32 %v419_v4, %v413_v63 }
  0xf5   :  { %v416_v9 = vadd.f32 %v551_v6, %v523_v1  ;;  %v433_v10 = vadd.f32 %v432_v7, %v430_v5 }
  0xf7   :  { %v421_v11 = vadd.f32 %v420_v8, %v416_v9  ;;  %v431_v12 = vmul.f32 %v416_v9, %v416_v9  ;;  %447 = vst [vmem:[%s759_s3 + $0x18] sm:$0xff] %v416_v9 }
  0xf9   :  { %v422_v13 = vrot.slane %v421_v11, 4  ;;  %v434_v14 = vadd.f32 %v433_v10, %v431_v12 }
  0xfb   :  { %v423_v15 = vadd.f32 %v422_v13, %v421_v11  ;;  %v435_v16 = vrot.slane %v434_v14, 4 }
  0xfd   :  { %v424_v17 = vrot.slane %v423_v15, 2  ;;  %v436_v18 = vadd.f32 %v435_v16, %v434_v14 }
  0xff   :  { %v425_v19 = vadd.f32 %v424_v17, %v423_v15  ;;  %v437_v20 = vrot.slane %v436_v18, 2 }
 0x101   :  { %v426_v21 = vrot.slane %v425_v19, 1  ;;  %v438_v22 = vadd.f32 %v437_v20, %v436_v18 }
 0x103   :  { %v439_v23 = vrot.slane %v438_v22, 1  ;;  %v427_v24 = vadd.f32 %v426_v21, %v425_v19 }
 0x105   :  { %v440_v25 = vadd.f32 %v439_v23, %v438_v22 }
 0x107   :  { %v442_v26 = vsel %vm441_vm0, %v427_v24, %v440_v25 }
 0x108   :  { %443 = vst [vmem:[%s760_s4] sm:$0x3] %v442_v26 }

// kernel: _lambda_.8
= control target key start
LH: loop header
LB: loop body
LE: loop exit
PB: predicated region body
PF: predicated region fallthrough
CT: control target
= control target key end

     0   :  { %vm843_vm0 = vcmask 1040384   ;;  %s1394_s1 = inlined_call_operand.vmem [shape: bf16[1024,128], index: 1, kind: input, shape index: {}]   ;;  %s1395_s2 = inlined_call_operand.vmem [shape: f32[1,128], index: 2, kind: input, shape index: {}]   ;;  %s1396_s0 = inlined_call_operand.vmem [shape: bf16[32,1024], index: 0, kind: input, shape index: {}]   ;;  %s1397_s3 = inlined_call_operand.vmem [shape: f32[32,128], index: 3, kind: output, shape index: {0}]   ;;  %s1398_s4 = inlined_call_operand.vmem [shape: f32[1,2,128], index: 4, kind: output, shape index: {1}]  }
   0x1   :  { %v1050_v0 = vld [vmem:[%s1394_s1 + $0x78] sm:$0xff]   ;;  %v1054_v4 = vld [vmem:[%s1394_s1 + $0x70] sm:$0xff]   ;;  %v1058_v8 = vld [vmem:[%s1394_s1 + $0x68] sm:$0xff]  }
   0x2   :  { %v1051_v1 = vld [vmem:[%s1394_s1 + $0xf8] sm:$0xff]   ;;  %938 = vmatprep.subr.bf16.mxu0 %v1050_v0  ;;  %v1055_v5 = vld [vmem:[%s1394_s1 + $0xf0] sm:$0xff]   ;;  %v1059_v9 = vld [vmem:[%s1394_s1 + $0xe8] sm:$0xff]  }
   0x3   :  { %v1052_v2 = vld [vmem:[%s1394_s1 + $0x38] sm:$0xff]   ;;  %966 = vmatprep.subr.bf16.mxu1 %v1051_v1  ;;  %v1056_v6 = vld [vmem:[%s1394_s1 + $0x30] sm:$0xff]   ;;  %v1060_v10 = vld [vmem:[%s1394_s1 + $0x28] sm:$0xff]  }
   0x4   :  { %v1053_v3 = vld [vmem:[%s1394_s1 + $0xb8] sm:$0xff]   ;;  %939 = vmatpush3.bf16.msra.mxu0 %v1052_v2  ;;  %v1057_v7 = vld [vmem:[%s1394_s1 + $0xb0] sm:$0xff]   ;;  %v1061_v11 = vld [vmem:[%s1394_s1 + $0xa8] sm:$0xff]  }
   0x5   :  { %967 = vmatpush3.bf16.msra.mxu1 %v1053_v3  ;;  %940 = vmatprep.subr.bf16.mxu0 %v1054_v4  ;;  %v1062_v12 = vld [vmem:[%s1394_s1 + $0x60] sm:$0xff]   ;;  %v1066_v16 = vld [vmem:[%s1394_s1 + $0x58] sm:$0xff]   ;;  %v1070_v20 = vld [vmem:[%s1394_s1 + $0x50] sm:$0xff]  }
   0x6   :  { %968 = vmatprep.subr.bf16.mxu1 %v1055_v5  ;;  %v1063_v13 = vld [vmem:[%s1394_s1 + $0xe0] sm:$0xff]   ;;  %v1067_v17 = vld [vmem:[%s1394_s1 + $0xd8] sm:$0xff]   ;;  %v1071_v21 = vld [vmem:[%s1394_s1 + $0xd0] sm:$0xff]  }
   0x7   :  { %v1064_v14 = vld [vmem:[%s1394_s1 + $0x20] sm:$0xff]   ;;  %v1068_v18 = vld [vmem:[%s1394_s1 + $0x18] sm:$0xff]   ;;  %v1072_v22 = vld [vmem:[%s1394_s1 + $0x10] sm:$0xff]  }
   0x8   :  { %941 = vmatpush3.bf16.msra.mxu0 %v1056_v6  ;;  %v1065_v15 = vld [vmem:[%s1394_s1 + $0xa0] sm:$0xff]   ;;  %v1069_v19 = vld [vmem:[%s1394_s1 + $0x98] sm:$0xff]   ;;  %v1073_v23 = vld [vmem:[%s1394_s1 + $0x90] sm:$0xff]  }
   0x9   :  { %969 = vmatpush3.bf16.msra.mxu1 %v1057_v7  ;;  %942 = vmatprep.subr.bf16.mxu0 %v1058_v8  ;;  %v1074_v24 = vld [vmem:[%s1394_s1 + $0x48] sm:$0xff]   ;;  %v1078_v28 = vld [vmem:[%s1394_s1 + $0x40] sm:$0xff]   ;;  %v1082_v40 = vld [vmem:[%s1394_s1 + $0x178] sm:$0xff]  }
   0xa   :  { %970 = vmatprep.subr.bf16.mxu1 %v1059_v9  ;;  %v1075_v25 = vld [vmem:[%s1394_s1 + $0xc8] sm:$0xff]   ;;  %v1079_v29 = vld [vmem:[%s1394_s1 + $0xc0] sm:$0xff]   ;;  %v1083_v41 = vld [vmem:[%s1394_s1 + $0x1f8] sm:$0xff]  }
   0xb   :  { %v1076_v26 = vld [vmem:[%s1394_s1 + $0x8] sm:$0xff]   ;;  %v1080_v30 = vld [vmem:[%s1394_s1] sm:$0xff]   ;;  %v1084_v42 = vld [vmem:[%s1394_s1 + $0x138] sm:$0xff]  }
   0xc   :  { %943 = vmatpush3.bf16.msra.mxu0 %v1060_v10  ;;  %v1077_v27 = vld [vmem:[%s1394_s1 + $0x88] sm:$0xff]   ;;  %v1081_v31 = vld [vmem:[%s1394_s1 + $0x80] sm:$0xff]   ;;  %v1085_v43 = vld [vmem:[%s1394_s1 + $0x1b8] sm:$0xff]  }
   0xd   :  { %971 = vmatpush3.bf16.msra.mxu1 %v1061_v11  ;;  %944 = vmatprep.subr.bf16.mxu0 %v1062_v12  ;;  %v17_v32 = vld [vmem:[%s1396_s0] sm:$0xff]  ;;  %v18_v34 = vld [vmem:[%s1396_s0 + $0x8] sm:$0xff]  ;;  %v1086_v44 = vld [vmem:[%s1394_s1 + $0x170] sm:$0xff]  }
   0xe   :  { %972 = vmatprep.subr.bf16.mxu1 %v1063_v13  ;;  %v21_v33 = vld [vmem:[%s1396_s0 + $0x20] sm:$0xff]  ;;  %v22_v37 = vld [vmem:[%s1396_s0 + $0x28] sm:$0xff]  ;;  %v1087_v45 = vld [vmem:[%s1394_s1 + $0x1f0] sm:$0xff]  }
   0xf   :  { %v858_v35 = vcombine.low %v17_v32, %v21_v33  ;;  %v859_v36 = vcombine.high %v17_v32, %v21_v33  ;;  %v860_v38 = vcombine.low %v18_v34, %v22_v37  ;;  %v861_v39 = vcombine.high %v18_v34, %v22_v37  ;;  %v1088_v46 = vld [vmem:[%s1394_s1 + $0x130] sm:$0xff]   ;;  %v1090_v48 = vld [vmem:[%s1394_s1 + $0x168] sm:$0xff]   ;;  %v1094_v52 = vld [vmem:[%s1394_s1 + $0x160] sm:$0xff]  }
  0x10   :  { %945 = vmatpush3.bf16.msra.mxu0 %v1064_v14  ;;  %v1089_v47 = vld [vmem:[%s1394_s1 + $0x1b0] sm:$0xff]   ;;  %v1091_v49 = vld [vmem:[%s1394_s1 + $0x1e8] sm:$0xff]   ;;  %v1095_v53 = vld [vmem:[%s1394_s1 + $0x1e0] sm:$0xff]  }
  0x11   :  { %973 = vmatpush3.bf16.msra.mxu1 %v1065_v15  ;;  %946 = vmatprep.subr.bf16.mxu0 %v1066_v16  ;;  %v1092_v50 = vld [vmem:[%s1394_s1 + $0x128] sm:$0xff]   ;;  %v1096_v54 = vld [vmem:[%s1394_s1 + $0x120] sm:$0xff]   ;;  %v1098_v56 = vld [vmem:[%s1394_s1 + $0x158] sm:$0xff]  }
  0x12   :  { %974 = vmatprep.subr.bf16.mxu1 %v1067_v17  ;;  %657 = vmatprep.mubr.bf16.mxu0 %v859_v36  ;;  %v1093_v51 = vld [vmem:[%s1394_s1 + $0x1a8] sm:$0xff]   ;;  %v1097_v55 = vld [vmem:[%s1394_s1 + $0x1a0] sm:$0xff]   ;;  %v1099_v57 = vld [vmem:[%s1394_s1 + $0x1d8] sm:$0xff]  }
  0x13   :  { %706 = vmatprep.mubr.bf16.mxu1 %v861_v39  ;;  %v25_v58 = vld [vmem:[%s1396_s0 + $0x40] sm:$0xff]  ;;  %v26_v61 = vld [vmem:[%s1396_s0 + $0x48] sm:$0xff]  ;;  %v1100_v1 = vld [vmem:[%s1394_s1 + $0x118] sm:$0xff]  }
  0x14   :  { %947 = vmatpush3.bf16.msra.mxu0 %v1068_v18  ;;  %v29_v59 = vld [vmem:[%s1396_s0 + $0x60] sm:$0xff]  ;;  %v30_v62 = vld [vmem:[%s1396_s0 + $0x68] sm:$0xff]  ;;  %v1101_v3 = vld [vmem:[%s1394_s1 + $0x198] sm:$0xff]  }
  0x15   :  { %975 = vmatpush3.bf16.msra.mxu1 %v1069_v19  ;;  %948 = vmatprep.subr.bf16.mxu0 %v1070_v20  ;;  %v867_v60 = vcombine.high %v25_v58, %v29_v59  ;;  %v866_v63 = vcombine.low %v25_v58, %v29_v59  ;;  %v869_v0 = vcombine.high %v26_v61, %v30_v62  ;;  %v1102_v4 = vld [vmem:[%s1394_s1 + $0x150] sm:$0xff]   ;;  %v1106_v8 = vld [vmem:[%s1394_s1 + $0x148] sm:$0xff]   ;;  %v1110_v12 = vld [vmem:[%s1394_s1 + $0x140] sm:$0xff]  }
  0x16   :  { %976 = vmatprep.subr.bf16.mxu1 %v1071_v21  ;;  %v868_v2 = vcombine.low %v26_v61, %v30_v62  ;;  %v1103_v5 = vld [vmem:[%s1394_s1 + $0x1d0] sm:$0xff]   ;;  %v1107_v9 = vld [vmem:[%s1394_s1 + $0x1c8] sm:$0xff]   ;;  %v1111_v13 = vld [vmem:[%s1394_s1 + $0x1c0] sm:$0xff]  }
  0x17   :  { %v1104_v6 = vld [vmem:[%s1394_s1 + $0x110] sm:$0xff]   ;;  %v1108_v10 = vld [vmem:[%s1394_s1 + $0x108] sm:$0xff]   ;;  %v1112_v14 = vld [vmem:[%s1394_s1 + $0x100] sm:$0xff]  }
  0x18   :  { %949 = vmatpush3.bf16.msra.mxu0 %v1072_v22  ;;  %v1105_v7 = vld [vmem:[%s1394_s1 + $0x190] sm:$0xff]   ;;  %v1109_v11 = vld [vmem:[%s1394_s1 + $0x188] sm:$0xff]   ;;  %v1113_v15 = vld [vmem:[%s1394_s1 + $0x180] sm:$0xff]  }
  0x19   :  { %977 = vmatpush3.bf16.msra.mxu1 %v1073_v23  ;;  %950 = vmatprep.subr.bf16.mxu0 %v1074_v24  ;;  %v19_v16 = vld [vmem:[%s1396_s0 + $0x10] sm:$0xff]  ;;  %v20_v18 = vld [vmem:[%s1396_s0 + $0x18] sm:$0xff] }
  0x1a   :  { %978 = vmatprep.subr.bf16.mxu1 %v1075_v25  ;;  %v23_v17 = vld [vmem:[%s1396_s0 + $0x30] sm:$0xff]  ;;  %v24_v19 = vld [vmem:[%s1396_s0 + $0x38] sm:$0xff] }
  0x1b   :  { %v862_v20 = vcombine.low %v19_v16, %v23_v17  ;;  %v863_v21 = vcombine.high %v19_v16, %v23_v17  ;;  %v864_v22 = vcombine.low %v20_v18, %v24_v19  ;;  %v865_v23 = vcombine.high %v20_v18, %v24_v19  ;;  %v27_v24 = vld [vmem:[%s1396_s0 + $0x50] sm:$0xff] }
  0x1c   :  { %951 = vmatpush3.bf16.msra.mxu0 %v1076_v26  ;;  %v31_v25 = vld [vmem:[%s1396_s0 + $0x70] sm:$0xff]  ;;  %v28_v26 = vld [vmem:[%s1396_s0 + $0x58] sm:$0xff] }
  0x1d   :  { %979 = vmatpush3.bf16.msra.mxu1 %v1077_v27  ;;  %952 = vmatprep.subr.bf16.mxu0 %v1078_v28  ;;  %v871_v27 = vcombine.high %v27_v24, %v31_v25  ;;  %v32_v28 = vld [vmem:[%s1396_s0 + $0x78] sm:$0xff] }
  0x1e   :  { %980 = vmatprep.subr.bf16.mxu1 %v1079_v29  ;;  %v873_v29 = vcombine.high %v28_v26, %v32_v28 }
  0x20   :  { %953 = vmatpush3.bf16.msra.mxu0 %v1080_v30  ;;  %v870_v30 = vcombine.low %v27_v24, %v31_v25 }
  0x21   :  { %981 = vmatpush3.bf16.msra.mxu1 %v1081_v31  ;;  %994 = vmatprep.subr.bf16.mxu0 %v1082_v40  ;;  %v872_v31 = vcombine.low %v28_v26, %v32_v28 }
  0x22   :  { %1022 = vmatprep.subr.bf16.mxu1 %v1083_v41 }
  0x23   :  { %658 = vmatmul.mubr.bf16.vlgmr.msra.gmra.mxu0 %v858_v35 }
  0x24   :  { %707 = vmatmul.mubr.bf16.vlgmr.msra.gmra.mxu1 %v860_v38  ;;  %995 = vmatpush3.bf16.msra.mxu0 %v1084_v42 }
  0x25   :  { %1023 = vmatpush3.bf16.msra.mxu1 %v1085_v43  ;;  %996 = vmatprep.subr.bf16.mxu0 %v1086_v44 }
  0x26   :  { %1024 = vmatprep.subr.bf16.mxu1 %v1087_v45  ;;  %665 = vmatprep.mubr.bf16.mxu0 %v867_v60 }
  0x27   :  { %714 = vmatprep.mubr.bf16.mxu1 %v869_v0 }
  0x28   :  { %997 = vmatpush3.bf16.msra.mxu0 %v1088_v46 }
  0x29   :  { %1025 = vmatpush3.bf16.msra.mxu1 %v1089_v47  ;;  %998 = vmatprep.subr.bf16.mxu0 %v1090_v48 }
  0x2a   :  { %1026 = vmatprep.subr.bf16.mxu1 %v1091_v49 }
  0x2b   :  { %666 = vmatmul.mubr.bf16.gmra.mxu0 %v866_v63 }
  0x2c   :  { %999 = vmatpush3.bf16.msra.mxu0 %v1092_v50  ;;  %715 = vmatmul.mubr.bf16.gmra.mxu1 %v868_v2 }
  0x2d   :  { %1027 = vmatpush3.bf16.msra.mxu1 %v1093_v51  ;;  %1000 = vmatprep.subr.bf16.mxu0 %v1094_v52 }
  0x2e   :  { %1028 = vmatprep.subr.bf16.mxu1 %v1095_v53  ;;  %755 = vmatprep.mubr.bf16.mxu0 %v863_v21 }
  0x2f   :  { %804 = vmatprep.mubr.bf16.mxu1 %v865_v23 }
  0x30   :  { %1001 = vmatpush3.bf16.msra.mxu0 %v1096_v54 }
  0x31   :  { %1029 = vmatpush3.bf16.msra.mxu1 %v1097_v55  ;;  %1002 = vmatprep.subr.bf16.mxu0 %v1098_v56 }
  0x32   :  { %1030 = vmatprep.subr.bf16.mxu1 %v1099_v57 }
  0x34   :  { %1003 = vmatpush3.bf16.msra.mxu0 %v1100_v1 }
  0x35   :  { %1031 = vmatpush3.bf16.msra.mxu1 %v1101_v3  ;;  %1004 = vmatprep.subr.bf16.mxu0 %v1102_v4 }
  0x36   :  { %1032 = vmatprep.subr.bf16.mxu1 %v1103_v5 }
  0x38   :  { %1005 = vmatpush3.bf16.msra.mxu0 %v1104_v6 }
  0x39   :  { %1033 = vmatpush3.bf16.msra.mxu1 %v1105_v7  ;;  %1006 = vmatprep.subr.bf16.mxu0 %v1106_v8 }
  0x3a   :  { %1034 = vmatprep.subr.bf16.mxu1 %v1107_v9 }
  0x3c   :  { %1007 = vmatpush3.bf16.msra.mxu0 %v1108_v10 }
  0x3d   :  { %1035 = vmatpush3.bf16.msra.mxu1 %v1109_v11  ;;  %1008 = vmatprep.subr.bf16.mxu0 %v1110_v12 }
  0x3e   :  { %1036 = vmatprep.subr.bf16.mxu1 %v1111_v13 }
  0x40   :  { %1009 = vmatpush3.bf16.msra.mxu0 %v1112_v14 }
  0x41   :  { %1037 = vmatpush3.bf16.msra.mxu1 %v1113_v15 }
  0x43   :  { %756 = vmatmul.mubr.bf16.vlgmr.msra.gmra.mxu0 %v862_v20 }
  0x44   :  { %805 = vmatmul.mubr.bf16.vlgmr.msra.gmra.mxu1 %v864_v22  ;;  %763 = vmatprep.mubr.bf16.mxu0 %v871_v27 }
  0x45   :  { %812 = vmatprep.mubr.bf16.mxu1 %v873_v29 }
  0x4b   :  { %764 = vmatmul.mubr.bf16.gmra.mxu0 %v870_v30 }
  0x4c   :  { %813 = vmatmul.mubr.bf16.gmra.mxu1 %v872_v31 }
  0xe3   :  { %v954_v32 = vpop.f32.mrf.mxu0 }
  0xe4   :  { %v982_v33 = vpop.f32.mrf.mxu1 }
  0xe5   :  { %v955_v34 = vpop.f32.mrf.mxu0 }
  0xe6   :  { %v983_v35 = vpop.f32.mrf.mxu1  ;;  %v956_v48 = vadd.f32 %v955_v34, %v954_v32 }
  0xe7   :  { %v957_v36 = vpop.f32.mrf.mxu0  ;;  %v984_v49 = vadd.f32 %v983_v35, %v982_v33 }
  0xe8   :  { %v985_v37 = vpop.f32.mrf.mxu1 }
  0xe9   :  { %v958_v38 = vpop.f32.mrf.mxu0  ;;  %v709_v54 = vadd.f32 %v984_v49, %v956_v48 }
  0xea   :  { %v986_v39 = vpop.f32.mrf.mxu1  ;;  %v959_v55 = vadd.f32 %v958_v38, %v957_v36 }
  0xeb   :  { %v960_v40 = vpop.f32.mrf.mxu0  ;;  %v987_v56 = vadd.f32 %v986_v39, %v985_v37 }
  0xec   :  { %v988_v41 = vpop.f32.mrf.mxu1 }
  0xed   :  { %v961_v42 = vpop.f32.mrf.mxu0  ;;  %v712_v2 = vadd.f32 %v987_v56, %v959_v55 }
  0xee   :  { %v989_v43 = vpop.f32.mrf.mxu1  ;;  %v962_v62 = vadd.f32 %v961_v42, %v960_v40 }
  0xef   :  { %v963_v44 = vpop.f32.mrf.mxu0  ;;  %v990_v63 = vadd.f32 %v989_v43, %v988_v41 }
  0xf0   :  { %v991_v45 = vpop.f32.mrf.mxu1 }
  0xf1   :  { %v964_v46 = vpop.f32.mrf.mxu0  ;;  %v717_v9 = vadd.f32 %v990_v63, %v962_v62 }
  0xf2   :  { %v992_v47 = vpop.f32.mrf.mxu1  ;;  %v965_v12 = vadd.f32 %v964_v46, %v963_v44 }
  0xf3   :  { %v993_v13 = vadd.f32 %v992_v47, %v991_v45 }
  0xf5   :  { %v720_v22 = vadd.f32 %v993_v13, %v965_v12 }
 0x103   :  { %v1010_v50 = vpop.f32.mrf.mxu0 }
 0x104   :  { %v1038_v51 = vpop.f32.mrf.mxu1 }
 0x105   :  { %v1011_v52 = vpop.f32.mrf.mxu0 }
 0x106   :  { %v1039_v53 = vpop.f32.mrf.mxu1  ;;  %v1012_v57 = vadd.f32 %v1011_v52, %v1010_v50 }
 0x107   :  { %v1013_v58 = vpop.f32.mrf.mxu0  ;;  %v1040_v61 = vadd.f32 %v1039_v53, %v1038_v51 }
 0x108   :  { %v1041_v59 = vpop.f32.mrf.mxu1  ;;  %v758_v60 = vadd.f32 %v1012_v57, %v709_v54 }
 0x109   :  { %v1014_v0 = vpop.f32.mrf.mxu0 }
 0x10a   :  { %v1042_v1 = vpop.f32.mrf.mxu1  ;;  %v807_v3 = vadd.f32 %v1040_v61, %v758_v60  ;;  %v1015_v4 = vadd.f32 %v1014_v0, %v1013_v58 }
 0x10b   :  { %v1016_v5 = vpop.f32.mrf.mxu0  ;;  %v1043_v8 = vadd.f32 %v1042_v1, %v1041_v59 }
 0x10c   :  { %v1044_v6 = vpop.f32.mrf.mxu1  ;;  %846 = vst [vmem:[%s1397_s3] sm:$0xff] %v807_v3  ;;  %v761_v7 = vadd.f32 %v1015_v4, %v712_v2  ;;  %v830_v26 = vmul.f32 %v807_v3, %v807_v3 }
 0x10d   :  { %v1017_v10 = vpop.f32.mrf.mxu0 }
 0x10e   :  { %v1045_v11 = vpop.f32.mrf.mxu1  ;;  %v810_v14 = vadd.f32 %v1043_v8, %v761_v7  ;;  %v1018_v15 = vadd.f32 %v1017_v10, %v1016_v5 }
 0x10f   :  { %v1019_v16 = vpop.f32.mrf.mxu0  ;;  %v1046_v19 = vadd.f32 %v1045_v11, %v1044_v6 }
 0x110   :  { %v1047_v17 = vpop.f32.mrf.mxu1  ;;  %847 = vst [vmem:[%s1397_s3 + $0x8] sm:$0xff] %v810_v14  ;;  %v766_v18 = vadd.f32 %v1018_v15, %v717_v9  ;;  %v831_v23 = vmul.f32 %v810_v14, %v810_v14  ;;  %v821_v27 = vadd.f32 %v810_v14, %v807_v3 }
 0x111   :  { %v1020_v20 = vpop.f32.mrf.mxu0 }
 0x112   :  { %v1048_v21 = vpop.f32.mrf.mxu1  ;;  %v815_v24 = vadd.f32 %v1046_v19, %v766_v18  ;;  %v1021_v25 = vadd.f32 %v1020_v20, %v1019_v16  ;;  %v834_v31 = vadd.f32 %v831_v23, %v830_v26 }
 0x113   :  { %v1049_v30 = vadd.f32 %v1048_v21, %v1047_v17 }
 0x114   :  { %v832_v28 = vmul.f32 %v815_v24, %v815_v24  ;;  %848 = vst [vmem:[%s1397_s3 + $0x10] sm:$0xff] %v815_v24  ;;  %v769_v29 = vadd.f32 %v1021_v25, %v720_v22  ;;  %v822_v32 = vadd.f32 %v821_v27, %v815_v24 }
 0x116   :  { %v818_v33 = vadd.f32 %v1049_v30, %v769_v29  ;;  %v835_v34 = vadd.f32 %v834_v31, %v832_v28 }
 0x118   :  { %v823_v35 = vadd.f32 %v822_v32, %v818_v33  ;;  %v833_v36 = vmul.f32 %v818_v33, %v818_v33  ;;  %849 = vst [vmem:[%s1397_s3 + $0x18] sm:$0xff] %v818_v33 }
 0x11a   :  { %v824_v37 = vrot.slane %v823_v35, 4  ;;  %v836_v38 = vadd.f32 %v835_v34, %v833_v36 }
 0x11c   :  { %v825_v39 = vadd.f32 %v824_v37, %v823_v35  ;;  %v837_v40 = vrot.slane %v836_v38, 4 }
 0x11e   :  { %v826_v41 = vrot.slane %v825_v39, 2  ;;  %v838_v42 = vadd.f32 %v837_v40, %v836_v38 }
 0x120   :  { %v827_v43 = vadd.f32 %v826_v41, %v825_v39  ;;  %v839_v44 = vrot.slane %v838_v42, 2 }
 0x122   :  { %v828_v45 = vrot.slane %v827_v43, 1  ;;  %v840_v46 = vadd.f32 %v839_v44, %v838_v42 }
 0x124   :  { %v841_v47 = vrot.slane %v840_v46, 1  ;;  %v829_v48 = vadd.f32 %v828_v45, %v827_v43 }
 0x126   :  { %v842_v49 = vadd.f32 %v841_v47, %v840_v46 }
 0x128   :  { %v844_v50 = vsel %vm843_vm0, %v829_v48, %v842_v49 }
 0x129   :  { %845 = vst [vmem:[%s1398_s4] sm:$0x3] %v844_v50 }

// kernel: _lambda_.9
= control target key start
LH: loop header
LB: loop body
LE: loop exit
PB: predicated region body
PF: predicated region fallthrough
CT: control target
= control target key end

     0   :  { %s2456_s0 = inlined_call_operand.vmem [shape: bf16[16,2048], index: 0, kind: input, shape index: {}]   ;;  %s2457_s1 = inlined_call_operand.vmem [shape: bf16[2048,128], index: 1, kind: input, shape index: {}]   ;;  %s2458_s2 = inlined_call_operand.vmem [shape: f32[1,128], index: 2, kind: input, shape index: {}]   ;;  %s2459_s3 = inlined_call_operand.vmem [shape: f32[16,128], index: 3, kind: output, shape index: {0}]   ;;  %s2460_s4 = inlined_call_operand.hbm [shape: f32[1,2,128], index: 4, kind: output, shape index: {1}]  }
   0x1   :  { %v1836_v0 = vld [vmem:[%s2457_s1 + $0x78] sm:$0xff]   ;;  %v1840_v4 = vld [vmem:[%s2457_s1 + $0x70] sm:$0xff]   ;;  %v1844_v8 = vld [vmem:[%s2457_s1 + $0x68] sm:$0xff]  }
   0x2   :  { %v1837_v1 = vld [vmem:[%s2457_s1 + $0xf8] sm:$0xff]   ;;  %1659 = vmatprep.subr.bf16.mxu0 %v1836_v0  ;;  %v1841_v5 = vld [vmem:[%s2457_s1 + $0xf0] sm:$0xff]   ;;  %v1845_v9 = vld [vmem:[%s2457_s1 + $0xe8] sm:$0xff]  }
   0x3   :  { %v1838_v2 = vld [vmem:[%s2457_s1 + $0x38] sm:$0xff]   ;;  %1681 = vmatprep.subr.bf16.mxu1 %v1837_v1  ;;  %v1842_v6 = vld [vmem:[%s2457_s1 + $0x30] sm:$0xff]   ;;  %v1846_v10 = vld [vmem:[%s2457_s1 + $0x28] sm:$0xff]  }
   0x4   :  { %v1839_v3 = vld [vmem:[%s2457_s1 + $0xb8] sm:$0xff]   ;;  %1660 = vmatpush3.bf16.msra.mxu0 %v1838_v2  ;;  %v1843_v7 = vld [vmem:[%s2457_s1 + $0xb0] sm:$0xff]   ;;  %v1847_v11 = vld [vmem:[%s2457_s1 + $0xa8] sm:$0xff]  }
   0x5   :  { %1682 = vmatpush3.bf16.msra.mxu1 %v1839_v3  ;;  %1661 = vmatprep.subr.bf16.mxu0 %v1840_v4  ;;  %v1848_v12 = vld [vmem:[%s2457_s1 + $0x60] sm:$0xff]   ;;  %v1852_v16 = vld [vmem:[%s2457_s1 + $0x58] sm:$0xff]   ;;  %v1856_v20 = vld [vmem:[%s2457_s1 + $0x50] sm:$0xff]  }
   0x6   :  { %1683 = vmatprep.subr.bf16.mxu1 %v1841_v5  ;;  %v1849_v13 = vld [vmem:[%s2457_s1 + $0xe0] sm:$0xff]   ;;  %v1853_v17 = vld [vmem:[%s2457_s1 + $0xd8] sm:$0xff]   ;;  %v1857_v21 = vld [vmem:[%s2457_s1 + $0xd0] sm:$0xff]  }
   0x7   :  { %v1850_v14 = vld [vmem:[%s2457_s1 + $0x20] sm:$0xff]   ;;  %v1854_v18 = vld [vmem:[%s2457_s1 + $0x18] sm:$0xff]   ;;  %v1858_v22 = vld [vmem:[%s2457_s1 + $0x10] sm:$0xff]  }
   0x8   :  { %1662 = vmatpush3.bf16.msra.mxu0 %v1842_v6  ;;  %v1851_v15 = vld [vmem:[%s2457_s1 + $0xa0] sm:$0xff]   ;;  %v1855_v19 = vld [vmem:[%s2457_s1 + $0x98] sm:$0xff]   ;;  %v1859_v23 = vld [vmem:[%s2457_s1 + $0x90] sm:$0xff]  }
   0x9   :  { %1684 = vmatpush3.bf16.msra.mxu1 %v1843_v7  ;;  %1663 = vmatprep.subr.bf16.mxu0 %v1844_v8  ;;  %v1860_v24 = vld [vmem:[%s2457_s1 + $0x48] sm:$0xff]   ;;  %v1864_v28 = vld [vmem:[%s2457_s1 + $0x40] sm:$0xff]   ;;  %v1868_v40 = vld [vmem:[%s2457_s1 + $0x178] sm:$0xff]  }
   0xa   :  { %1685 = vmatprep.subr.bf16.mxu1 %v1845_v9  ;;  %v1861_v25 = vld [vmem:[%s2457_s1 + $0xc8] sm:$0xff]   ;;  %v1865_v29 = vld [vmem:[%s2457_s1 + $0xc0] sm:$0xff]   ;;  %v1869_v41 = vld [vmem:[%s2457_s1 + $0x1f8] sm:$0xff]  }
   0xb   :  { %v1862_v26 = vld [vmem:[%s2457_s1 + $0x8] sm:$0xff]   ;;  %v1866_v30 = vld [vmem:[%s2457_s1] sm:$0xff]   ;;  %v1870_v42 = vld [vmem:[%s2457_s1 + $0x138] sm:$0xff]  }
   0xc   :  { %1664 = vmatpush3.bf16.msra.mxu0 %v1846_v10  ;;  %v1863_v27 = vld [vmem:[%s2457_s1 + $0x88] sm:$0xff]   ;;  %v1867_v31 = vld [vmem:[%s2457_s1 + $0x80] sm:$0xff]   ;;  %v1871_v43 = vld [vmem:[%s2457_s1 + $0x1b8] sm:$0xff]  }
   0xd   :  { %1686 = vmatpush3.bf16.msra.mxu1 %v1847_v11  ;;  %1665 = vmatprep.subr.bf16.mxu0 %v1848_v12  ;;  %v18_v32 = vld [vmem:[%s2456_s0] sm:$0xff]  ;;  %v19_v34 = vld [vmem:[%s2456_s0 + $0x8] sm:$0xff]  ;;  %v1872_v44 = vld [vmem:[%s2457_s1 + $0x170] sm:$0xff]  }
   0xe   :  { %1687 = vmatprep.subr.bf16.mxu1 %v1849_v13  ;;  %v26_v33 = vld [vmem:[%s2456_s0 + $0x40] sm:$0xff]  ;;  %v27_v37 = vld [vmem:[%s2456_s0 + $0x48] sm:$0xff]  ;;  %v1873_v45 = vld [vmem:[%s2457_s1 + $0x1f0] sm:$0xff]  }
   0xf   :  { %v1514_v35 = vcombine.low %v18_v32, %v26_v33  ;;  %v1515_v36 = vcombine.high %v18_v32, %v26_v33  ;;  %v1516_v38 = vcombine.low %v19_v34, %v27_v37  ;;  %v1517_v39 = vcombine.high %v19_v34, %v27_v37  ;;  %v1874_v46 = vld [vmem:[%s2457_s1 + $0x130] sm:$0xff]   ;;  %v1876_v48 = vld [vmem:[%s2457_s1 + $0x168] sm:$0xff]   ;;  %v1880_v52 = vld [vmem:[%s2457_s1 + $0x160] sm:$0xff]  }
  0x10   :  { %1666 = vmatpush3.bf16.msra.mxu0 %v1850_v14  ;;  %v1875_v47 = vld [vmem:[%s2457_s1 + $0x1b0] sm:$0xff]   ;;  %v1877_v49 = vld [vmem:[%s2457_s1 + $0x1e8] sm:$0xff]   ;;  %v1881_v53 = vld [vmem:[%s2457_s1 + $0x1e0] sm:$0xff]  }
  0x11   :  { %1688 = vmatpush3.bf16.msra.mxu1 %v1851_v15  ;;  %1667 = vmatprep.subr.bf16.mxu0 %v1852_v16  ;;  %v1878_v50 = vld [vmem:[%s2457_s1 + $0x128] sm:$0xff]   ;;  %v1882_v54 = vld [vmem:[%s2457_s1 + $0x120] sm:$0xff]   ;;  %v1884_v56 = vld [vmem:[%s2457_s1 + $0x158] sm:$0xff]  }
  0x12   :  { %1689 = vmatprep.subr.bf16.mxu1 %v1853_v17  ;;  %1170 = vmatprep.mubr.bf16.mxu0 %v1515_v36  ;;  %v1879_v51 = vld [vmem:[%s2457_s1 + $0x1a8] sm:$0xff]   ;;  %v1883_v55 = vld [vmem:[%s2457_s1 + $0x1a0] sm:$0xff]   ;;  %v1885_v57 = vld [vmem:[%s2457_s1 + $0x1d8] sm:$0xff]  }
  0x13   :  { %1211 = vmatprep.mubr.bf16.mxu1 %v1517_v39  ;;  %v1886_v58 = vld [vmem:[%s2457_s1 + $0x118] sm:$0xff]   ;;  %v1888_v60 = vld [vmem:[%s2457_s1 + $0x150] sm:$0xff]   ;;  %v1892_v0 = vld [vmem:[%s2457_s1 + $0x148] sm:$0xff]  }
  0x14   :  { %1668 = vmatpush3.bf16.msra.mxu0 %v1854_v18  ;;  %v1887_v59 = vld [vmem:[%s2457_s1 + $0x198] sm:$0xff]   ;;  %v1889_v61 = vld [vmem:[%s2457_s1 + $0x1d0] sm:$0xff]   ;;  %v1893_v1 = vld [vmem:[%s2457_s1 + $0x1c8] sm:$0xff]  }
  0x15   :  { %1690 = vmatpush3.bf16.msra.mxu1 %v1855_v19  ;;  %1669 = vmatprep.subr.bf16.mxu0 %v1856_v20  ;;  %v1890_v62 = vld [vmem:[%s2457_s1 + $0x110] sm:$0xff]   ;;  %v1894_v2 = vld [vmem:[%s2457_s1 + $0x108] sm:$0xff]   ;;  %v1896_v4 = vld [vmem:[%s2457_s1 + $0x140] sm:$0xff]  }
  0x16   :  { %1691 = vmatprep.subr.bf16.mxu1 %v1857_v21  ;;  %v1891_v63 = vld [vmem:[%s2457_s1 + $0x190] sm:$0xff]   ;;  %v1895_v3 = vld [vmem:[%s2457_s1 + $0x188] sm:$0xff]   ;;  %v1897_v5 = vld [vmem:[%s2457_s1 + $0x1c0] sm:$0xff]  }
  0x17   :  { %v1898_v6 = vld [vmem:[%s2457_s1 + $0x100] sm:$0xff]   ;;  %v20_v8 = vld [vmem:[%s2456_s0 + $0x10] sm:$0xff]  ;;  %v21_v12 = vld [vmem:[%s2456_s0 + $0x18] sm:$0xff] }
  0x18   :  { %1670 = vmatpush3.bf16.msra.mxu0 %v1858_v22  ;;  %v1899_v7 = vld [vmem:[%s2457_s1 + $0x180] sm:$0xff]   ;;  %v28_v9 = vld [vmem:[%s2456_s0 + $0x50] sm:$0xff]  ;;  %v29_v13 = vld [vmem:[%s2456_s0 + $0x58] sm:$0xff] }
  0x19   :  { %1692 = vmatpush3.bf16.msra.mxu1 %v1859_v23  ;;  %1671 = vmatprep.subr.bf16.mxu0 %v1860_v24  ;;  %v1518_v10 = vcombine.low %v20_v8, %v28_v9  ;;  %v1519_v11 = vcombine.high %v20_v8, %v28_v9  ;;  %v1520_v14 = vcombine.low %v21_v12, %v29_v13  ;;  %v1900_v16 = vld [vmem:[%s2457_s1 + $0x278] sm:$0xff]   ;;  %v1904_v20 = vld [vmem:[%s2457_s1 + $0x270] sm:$0xff]   ;;  %v1908_v24 = vld [vmem:[%s2457_s1 + $0x268] sm:$0xff]  }
  0x1a   :  { %1693 = vmatprep.subr.bf16.mxu1 %v1861_v25  ;;  %v1521_v15 = vcombine.high %v21_v12, %v29_v13  ;;  %v1901_v17 = vld [vmem:[%s2457_s1 + $0x2f8] sm:$0xff]   ;;  %v1905_v21 = vld [vmem:[%s2457_s1 + $0x2f0] sm:$0xff]   ;;  %v1909_v25 = vld [vmem:[%s2457_s1 + $0x2e8] sm:$0xff]  }
  0x1b   :  { %v1902_v18 = vld [vmem:[%s2457_s1 + $0x238] sm:$0xff]   ;;  %v1906_v22 = vld [vmem:[%s2457_s1 + $0x230] sm:$0xff]  }
  0x1c   :  { %1672 = vmatpush3.bf16.msra.mxu0 %v1862_v26  ;;  %v1903_v19 = vld [vmem:[%s2457_s1 + $0x2b8] sm:$0xff]   ;;  %v1907_v23 = vld [vmem:[%s2457_s1 + $0x2b0] sm:$0xff]   ;;  %v1910_v26 = vld [vmem:[%s2457_s1 + $0x228] sm:$0xff]  }
  0x1d   :  { %1694 = vmatpush3.bf16.msra.mxu1 %v1863_v27  ;;  %1673 = vmatprep.subr.bf16.mxu0 %v1864_v28  ;;  %v1911_v27 = vld [vmem:[%s2457_s1 + $0x2a8] sm:$0xff]   ;;  %v1912_v28 = vld [vmem:[%s2457_s1 + $0x260] sm:$0xff]   ;;  %v1916_v32 = vld [vmem:[%s2457_s1 + $0x258] sm:$0xff]  }
  0x1e   :  { %1695 = vmatprep.subr.bf16.mxu1 %v1865_v29  ;;  %v1913_v29 = vld [vmem:[%s2457_s1 + $0x2e0] sm:$0xff]   ;;  %v1917_v33 = vld [vmem:[%s2457_s1 + $0x2d8] sm:$0xff]   ;;  %v1920_v36 = vld [vmem:[%s2457_s1 + $0x250] sm:$0xff]  }
  0x1f   :  { %v1918_v34 = vld [vmem:[%s2457_s1 + $0x218] sm:$0xff]   ;;  %v1921_v37 = vld [vmem:[%s2457_s1 + $0x2d0] sm:$0xff]  }
  0x20   :  { %1674 = vmatpush3.bf16.msra.mxu0 %v1866_v30  ;;  %v1914_v30 = vld [vmem:[%s2457_s1 + $0x220] sm:$0xff]   ;;  %v1923_v39 = vld [vmem:[%s2457_s1 + $0x290] sm:$0xff]   ;;  %v1948_v8 = vld [vmem:[%s2457_s1 + $0x358] sm:$0xff]  }
  0x21   :  { %1696 = vmatpush3.bf16.msra.mxu1 %v1867_v31  ;;  %1703 = vmatprep.subr.bf16.mxu0 %v1868_v40  ;;  %v1915_v31 = vld [vmem:[%s2457_s1 + $0x2a0] sm:$0xff]   ;;  %v1924_v40 = vld [vmem:[%s2457_s1 + $0x248] sm:$0xff]   ;;  %v1949_v9 = vld [vmem:[%s2457_s1 + $0x3d8] sm:$0xff]  }
  0x22   :  { %1725 = vmatprep.subr.bf16.mxu1 %v1869_v41  ;;  %v1925_v41 = vld [vmem:[%s2457_s1 + $0x2c8] sm:$0xff]   ;;  %v1952_v12 = vld [vmem:[%s2457_s1 + $0x350] sm:$0xff]  }
  0x23   :  { %1171 = vmatmul.mubr.bf16.vlgmr.msra.gmra.mxu0 %v1514_v35  ;;  %v1919_v35 = vld [vmem:[%s2457_s1 + $0x298] sm:$0xff]   ;;  %v1953_v13 = vld [vmem:[%s2457_s1 + $0x3d0] sm:$0xff]  }
  0x24   :  { %1212 = vmatmul.mubr.bf16.vlgmr.msra.gmra.mxu1 %v1516_v38  ;;  %1704 = vmatpush3.bf16.msra.mxu0 %v1870_v42  ;;  %v1922_v38 = vld [vmem:[%s2457_s1 + $0x210] sm:$0xff]   ;;  %v1926_v42 = vld [vmem:[%s2457_s1 + $0x208] sm:$0xff]  }
  0x25   :  { %1726 = vmatpush3.bf16.msra.mxu1 %v1871_v43  ;;  %1705 = vmatprep.subr.bf16.mxu0 %v1872_v44  ;;  %v1927_v43 = vld [vmem:[%s2457_s1 + $0x288] sm:$0xff]   ;;  %v1928_v44 = vld [vmem:[%s2457_s1 + $0x240] sm:$0xff]  }
  0x26   :  { %1727 = vmatprep.subr.bf16.mxu1 %v1873_v45  ;;  %1252 = vmatprep.mubr.bf16.mxu0 %v1519_v11  ;;  %v1929_v45 = vld [vmem:[%s2457_s1 + $0x2c0] sm:$0xff]   ;;  %v1951_v11 = vld [vmem:[%s2457_s1 + $0x398] sm:$0xff]  }
  0x27   :  { %1293 = vmatprep.mubr.bf16.mxu1 %v1521_v15  ;;  %v1955_v15 = vld [vmem:[%s2457_s1 + $0x390] sm:$0xff]  }
  0x28   :  { %1706 = vmatpush3.bf16.msra.mxu0 %v1874_v46  ;;  %v1930_v46 = vld [vmem:[%s2457_s1 + $0x200] sm:$0xff]  }
  0x29   :  { %1728 = vmatpush3.bf16.msra.mxu1 %v1875_v47  ;;  %1707 = vmatprep.subr.bf16.mxu0 %v1876_v48  ;;  %v1931_v47 = vld [vmem:[%s2457_s1 + $0x280] sm:$0xff]  }
  0x2a   :  { %1729 = vmatprep.subr.bf16.mxu1 %v1877_v49  ;;  %v22_v48 = vld [vmem:[%s2456_s0 + $0x20] sm:$0xff] }
  0x2b   :  { %v30_v49 = vld [vmem:[%s2456_s0 + $0x60] sm:$0xff] }
  0x2c   :  { %1708 = vmatpush3.bf16.msra.mxu0 %v1878_v50  ;;  %v23_v50 = vld [vmem:[%s2456_s0 + $0x28] sm:$0xff] }
  0x2d   :  { %1730 = vmatpush3.bf16.msra.mxu1 %v1879_v51  ;;  %1709 = vmatprep.subr.bf16.mxu0 %v1880_v52  ;;  %v31_v51 = vld [vmem:[%s2456_s0 + $0x68] sm:$0xff]  ;;  %v1522_v52 = vcombine.low %v22_v48, %v30_v49 }
  0x2e   :  { %1731 = vmatprep.subr.bf16.mxu1 %v1881_v53  ;;  %v1523_v53 = vcombine.high %v22_v48, %v30_v49 }
  0x30   :  { %1710 = vmatpush3.bf16.msra.mxu0 %v1882_v54  ;;  %v1524_v54 = vcombine.low %v23_v50, %v31_v51 }
  0x31   :  { %1732 = vmatpush3.bf16.msra.mxu1 %v1883_v55  ;;  %1711 = vmatprep.subr.bf16.mxu0 %v1884_v56  ;;  %v1525_v55 = vcombine.high %v23_v50, %v31_v51  ;;  %v1932_v56 = vld [vmem:[%s2457_s1 + $0x378] sm:$0xff]  }
  0x32   :  { %1733 = vmatprep.subr.bf16.mxu1 %v1885_v57  ;;  %v1933_v57 = vld [vmem:[%s2457_s1 + $0x3f8] sm:$0xff]  }
  0x34   :  { %1712 = vmatpush3.bf16.msra.mxu0 %v1886_v58  ;;  %v1934_v58 = vld [vmem:[%s2457_s1 + $0x338] sm:$0xff]  }
  0x35   :  { %1734 = vmatpush3.bf16.msra.mxu1 %v1887_v59  ;;  %1713 = vmatprep.subr.bf16.mxu0 %v1888_v60  ;;  %v1935_v59 = vld [vmem:[%s2457_s1 + $0x3b8] sm:$0xff]   ;;  %v1936_v60 = vld [vmem:[%s2457_s1 + $0x370] sm:$0xff]  }
  0x36   :  { %1735 = vmatprep.subr.bf16.mxu1 %v1889_v61  ;;  %v1937_v61 = vld [vmem:[%s2457_s1 + $0x3f0] sm:$0xff]  }
  0x38   :  { %1714 = vmatpush3.bf16.msra.mxu0 %v1890_v62  ;;  %v1938_v62 = vld [vmem:[%s2457_s1 + $0x330] sm:$0xff]  }
  0x39   :  { %1736 = vmatpush3.bf16.msra.mxu1 %v1891_v63  ;;  %1715 = vmatprep.subr.bf16.mxu0 %v1892_v0  ;;  %v1939_v63 = vld [vmem:[%s2457_s1 + $0x3b0] sm:$0xff]   ;;  %v1940_v0 = vld [vmem:[%s2457_s1 + $0x368] sm:$0xff]  }
  0x3a   :  { %1737 = vmatprep.subr.bf16.mxu1 %v1893_v1  ;;  %v1941_v1 = vld [vmem:[%s2457_s1 + $0x3e8] sm:$0xff]  }
  0x3c   :  { %1716 = vmatpush3.bf16.msra.mxu0 %v1894_v2  ;;  %v1942_v2 = vld [vmem:[%s2457_s1 + $0x328] sm:$0xff]  }
  0x3d   :  { %1738 = vmatpush3.bf16.msra.mxu1 %v1895_v3  ;;  %1717 = vmatprep.subr.bf16.mxu0 %v1896_v4  ;;  %v1943_v3 = vld [vmem:[%s2457_s1 + $0x3a8] sm:$0xff]   ;;  %v1944_v4 = vld [vmem:[%s2457_s1 + $0x360] sm:$0xff]  }
  0x3e   :  { %1739 = vmatprep.subr.bf16.mxu1 %v1897_v5  ;;  %v1945_v5 = vld [vmem:[%s2457_s1 + $0x3e0] sm:$0xff]  }
  0x40   :  { %1718 = vmatpush3.bf16.msra.mxu0 %v1898_v6  ;;  %v1946_v6 = vld [vmem:[%s2457_s1 + $0x320] sm:$0xff]  }
  0x41   :  { %1740 = vmatpush3.bf16.msra.mxu1 %v1899_v7  ;;  %1747 = vmatprep.subr.bf16.mxu0 %v1900_v16  ;;  %v1947_v7 = vld [vmem:[%s2457_s1 + $0x3a0] sm:$0xff]   ;;  %v1956_v16 = vld [vmem:[%s2457_s1 + $0x348] sm:$0xff]  }
  0x42   :  { %1769 = vmatprep.subr.bf16.mxu1 %v1901_v17  ;;  %v1957_v17 = vld [vmem:[%s2457_s1 + $0x3c8] sm:$0xff]  }
  0x43   :  { %1253 = vmatmul.mubr.bf16.vlgmr.msra.gmra.mxu0 %v1518_v10  ;;  %v1950_v10 = vld [vmem:[%s2457_s1 + $0x318] sm:$0xff]  }
  0x44   :  { %1294 = vmatmul.mubr.bf16.vlgmr.msra.gmra.mxu1 %v1520_v14  ;;  %1748 = vmatpush3.bf16.msra.mxu0 %v1902_v18  ;;  %v1954_v14 = vld [vmem:[%s2457_s1 + $0x310] sm:$0xff]   ;;  %v1958_v18 = vld [vmem:[%s2457_s1 + $0x308] sm:$0xff]  }
  0x45   :  { %1770 = vmatpush3.bf16.msra.mxu1 %v1903_v19  ;;  %1749 = vmatprep.subr.bf16.mxu0 %v1904_v20  ;;  %v1959_v19 = vld [vmem:[%s2457_s1 + $0x388] sm:$0xff]   ;;  %v1960_v20 = vld [vmem:[%s2457_s1 + $0x340] sm:$0xff]  }
  0x46   :  { %1771 = vmatprep.subr.bf16.mxu1 %v1905_v21  ;;  %1334 = vmatprep.mubr.bf16.mxu0 %v1523_v53  ;;  %v1961_v21 = vld [vmem:[%s2457_s1 + $0x3c0] sm:$0xff]  }
  0x47   :  { %1375 = vmatprep.mubr.bf16.mxu1 %v1525_v55 }
  0x48   :  { %1750 = vmatpush3.bf16.msra.mxu0 %v1906_v22  ;;  %v1962_v22 = vld [vmem:[%s2457_s1 + $0x300] sm:$0xff]  }
  0x49   :  { %1772 = vmatpush3.bf16.msra.mxu1 %v1907_v23  ;;  %1751 = vmatprep.subr.bf16.mxu0 %v1908_v24  ;;  %v1963_v23 = vld [vmem:[%s2457_s1 + $0x380] sm:$0xff]   ;;  %v24_v24 = vld [vmem:[%s2456_s0 + $0x30] sm:$0xff] }
  0x4a   :  { %1773 = vmatprep.subr.bf16.mxu1 %v1909_v25  ;;  %v32_v25 = vld [vmem:[%s2456_s0 + $0x70] sm:$0xff] }
  0x4c   :  { %1752 = vmatpush3.bf16.msra.mxu0 %v1910_v26  ;;  %v25_v26 = vld [vmem:[%s2456_s0 + $0x38] sm:$0xff] }
  0x4d   :  { %1774 = vmatpush3.bf16.msra.mxu1 %v1911_v27  ;;  %1753 = vmatprep.subr.bf16.mxu0 %v1912_v28  ;;  %v1526_v27 = vcombine.low %v24_v24, %v32_v25  ;;  %v1527_v28 = vcombine.high %v24_v24, %v32_v25 }
  0x4e   :  { %1775 = vmatprep.subr.bf16.mxu1 %v1913_v29  ;;  %v33_v29 = vld [vmem:[%s2456_s0 + $0x78] sm:$0xff] }
  0x50   :  { %1754 = vmatpush3.bf16.msra.mxu0 %v1914_v30 }
  0x51   :  { %1776 = vmatpush3.bf16.msra.mxu1 %v1915_v31  ;;  %1755 = vmatprep.subr.bf16.mxu0 %v1916_v32 }
  0x52   :  { %1777 = vmatprep.subr.bf16.mxu1 %v1917_v33 }
  0x54   :  { %1756 = vmatpush3.bf16.msra.mxu0 %v1918_v34 }
  0x55   :  { %1778 = vmatpush3.bf16.msra.mxu1 %v1919_v35  ;;  %1757 = vmatprep.subr.bf16.mxu0 %v1920_v36 }
  0x56   :  { %1779 = vmatprep.subr.bf16.mxu1 %v1921_v37 }
  0x58   :  { %1758 = vmatpush3.bf16.msra.mxu0 %v1922_v38 }
  0x59   :  { %1780 = vmatpush3.bf16.msra.mxu1 %v1923_v39  ;;  %1759 = vmatprep.subr.bf16.mxu0 %v1924_v40 }
  0x5a   :  { %1781 = vmatprep.subr.bf16.mxu1 %v1925_v41 }
  0x5c   :  { %1760 = vmatpush3.bf16.msra.mxu0 %v1926_v42 }
  0x5d   :  { %1782 = vmatpush3.bf16.msra.mxu1 %v1927_v43  ;;  %1761 = vmatprep.subr.bf16.mxu0 %v1928_v44 }
  0x5e   :  { %1783 = vmatprep.subr.bf16.mxu1 %v1929_v45 }
  0x60   :  { %1762 = vmatpush3.bf16.msra.mxu0 %v1930_v46 }
  0x61   :  { %1784 = vmatpush3.bf16.msra.mxu1 %v1931_v47  ;;  %1791 = vmatprep.subr.bf16.mxu0 %v1932_v56 }
  0x62   :  { %1813 = vmatprep.subr.bf16.mxu1 %v1933_v57 }
  0x63   :  { %1335 = vmatmul.mubr.bf16.vlgmr.msra.gmra.mxu0 %v1522_v52 }
  0x64   :  { %1376 = vmatmul.mubr.bf16.vlgmr.msra.gmra.mxu1 %v1524_v54  ;;  %1792 = vmatpush3.bf16.msra.mxu0 %v1934_v58 }
  0x65   :  { %1814 = vmatpush3.bf16.msra.mxu1 %v1935_v59  ;;  %1793 = vmatprep.subr.bf16.mxu0 %v1936_v60 }
  0x66   :  { %1815 = vmatprep.subr.bf16.mxu1 %v1937_v61 }
  0x68   :  { %1794 = vmatpush3.bf16.msra.mxu0 %v1938_v62 }
  0x69   :  { %1816 = vmatpush3.bf16.msra.mxu1 %v1939_v63  ;;  %1795 = vmatprep.subr.bf16.mxu0 %v1940_v0 }
  0x6a   :  { %1817 = vmatprep.subr.bf16.mxu1 %v1941_v1 }
  0x6c   :  { %1796 = vmatpush3.bf16.msra.mxu0 %v1942_v2 }
  0x6d   :  { %1818 = vmatpush3.bf16.msra.mxu1 %v1943_v3  ;;  %1797 = vmatprep.subr.bf16.mxu0 %v1944_v4 }
  0x6e   :  { %1819 = vmatprep.subr.bf16.mxu1 %v1945_v5 }
  0x70   :  { %1798 = vmatpush3.bf16.msra.mxu0 %v1946_v6 }
  0x71   :  { %1820 = vmatpush3.bf16.msra.mxu1 %v1947_v7  ;;  %1799 = vmatprep.subr.bf16.mxu0 %v1948_v8 }
  0x72   :  { %1821 = vmatprep.subr.bf16.mxu1 %v1949_v9 }
  0x74   :  { %1800 = vmatpush3.bf16.msra.mxu0 %v1950_v10 }
  0x75   :  { %1822 = vmatpush3.bf16.msra.mxu1 %v1951_v11  ;;  %1801 = vmatprep.subr.bf16.mxu0 %v1952_v12 }
  0x76   :  { %1823 = vmatprep.subr.bf16.mxu1 %v1953_v13 }
  0x78   :  { %1802 = vmatpush3.bf16.msra.mxu0 %v1954_v14 }
  0x79   :  { %1824 = vmatpush3.bf16.msra.mxu1 %v1955_v15  ;;  %1803 = vmatprep.subr.bf16.mxu0 %v1956_v16 }
  0x7a   :  { %1825 = vmatprep.subr.bf16.mxu1 %v1957_v17 }
  0x7c   :  { %1804 = vmatpush3.bf16.msra.mxu0 %v1958_v18 }
  0x7d   :  { %1826 = vmatpush3.bf16.msra.mxu1 %v1959_v19  ;;  %1805 = vmatprep.subr.bf16.mxu0 %v1960_v20 }
  0x7e   :  { %1827 = vmatprep.subr.bf16.mxu1 %v1961_v21 }
  0x80   :  { %1806 = vmatpush3.bf16.msra.mxu0 %v1962_v22 }
  0x81   :  { %1828 = vmatpush3.bf16.msra.mxu1 %v1963_v23 }
  0x82   :  { %10 = vsyncpa [#allocation3], 0  ;;  %v1528_v30 = vcombine.low %v25_v26, %v33_v29  ;;  %v1529_v31 = vcombine.high %v25_v26, %v33_v29  ;;  %1416 = vmatprep.mubr.bf16.mxu0 %v1527_v28  ;;  %v1658_v22 = vld [vmem:[%s2458_s2] ss:$0 sm:$0xff]  ;;  %s1986_s20 = smov [#allocation2]   ;;  %vm1482_vm0 = vcmask 1040384  }
  0x83   :  { %1417 = vmatmul.mubr.bf16.vlgmr.msra.gmra.mxu0 %v1526_v27  ;;  %s1504_s21 = sshll.u32 %s1986_s20, 4  ;;  %s1505_s21 = int_to_ptr.vmem [resolvable:$true] %s1504_s21 }
  0x84   :  { %1457 = vmatprep.mubr.bf16.mxu1 %v1529_v31  ;;  %s1964_s22 = scalar_lea.vmem %s1505_s21, 32  ;;  %p1969_p1 = scmp.lt.s32.totalorder %s1505_s21, %s1505_s21 }
  0x85   :  { %1458 = vmatmul.mubr.bf16.vlgmr.msra.gmra.mxu1 %v1528_v30  ;;  %p1965_p0 = scmp.ne.s32.totalorder %s1505_s21, %s1964_s22  ;;  %p1970_p2 = scmp.lt.s32.totalorder %s1964_s22, %s1964_s22 }
  0x87   :  { %p1971_p3 = por %p1970_p2, %p1969_p1 }
  0x89   :  { %p1972_p4 = pnand %p1971_p3, %p1965_p0 }
  0xe3   :  { %v1675_v32 = vpop.f32.mrf.mxu0 }
  0xe4   :  { %v1697_v33 = vpop.f32.mrf.mxu1 }
  0xe5   :  { %v1676_v34 = vpop.f32.mrf.mxu0 }
  0xe6   :  { %v1698_v35 = vpop.f32.mrf.mxu1  ;;  %v1677_v49 = vadd.f32 %v1676_v34, %v1675_v32 }
  0xe7   :  { %v1678_v36 = vpop.f32.mrf.mxu0  ;;  %v1699_v50 = vadd.f32 %v1698_v35, %v1697_v33 }
  0xe8   :  { %v1700_v37 = vpop.f32.mrf.mxu1 }
  0xe9   :  { %v1679_v38 = vpop.f32.mrf.mxu0  ;;  %v1214_v54 = vadd.f32 %v1699_v50, %v1677_v49 }
  0xea   :  { %v1701_v40 = vpop.f32.mrf.mxu1  ;;  %v1680_v55 = vadd.f32 %v1679_v38, %v1678_v36 }
  0xeb   :  { %v1702_v56 = vadd.f32 %v1701_v40, %v1700_v37 }
  0xed   :  { %v1217_v62 = vadd.f32 %v1702_v56, %v1680_v55 }
 0x103   :  { %v1719_v39 = vpop.f32.mrf.mxu0 }
 0x104   :  { %v1741_v41 = vpop.f32.mrf.mxu1 }
 0x105   :  { %v1720_v42 = vpop.f32.mrf.mxu0 }
 0x106   :  { %v1742_v43 = vpop.f32.mrf.mxu1  ;;  %v1721_v53 = vadd.f32 %v1720_v42, %v1719_v39 }
 0x107   :  { %v1722_v44 = vpop.f32.mrf.mxu0  ;;  %v1743_v60 = vadd.f32 %v1742_v43, %v1741_v41 }
 0x108   :  { %v1744_v45 = vpop.f32.mrf.mxu1  ;;  %v1255_v59 = vadd.f32 %v1721_v53, %v1214_v54 }
 0x109   :  { %v1723_v46 = vpop.f32.mrf.mxu0 }
 0x10a   :  { %v1745_v48 = vpop.f32.mrf.mxu1  ;;  %v1724_v61 = vadd.f32 %v1723_v46, %v1722_v44  ;;  %v1296_v2 = vadd.f32 %v1743_v60, %v1255_v59 }
 0x10b   :  { %v1746_v4 = vadd.f32 %v1745_v48, %v1744_v45 }
 0x10c   :  { %v1258_v3 = vadd.f32 %v1724_v61, %v1217_v62 }
 0x10e   :  { %v1299_v10 = vadd.f32 %v1746_v4, %v1258_v3 }
 0x123   :  { %v1763_v47 = vpop.f32.mrf.mxu0 }
 0x124   :  { %v1785_v51 = vpop.f32.mrf.mxu1 }
 0x125   :  { %v1764_v52 = vpop.f32.mrf.mxu0 }
 0x126   :  { %v1786_v57 = vpop.f32.mrf.mxu1  ;;  %v1765_v63 = vadd.f32 %v1764_v52, %v1763_v47 }
 0x127   :  { %v1766_v58 = vpop.f32.mrf.mxu0  ;;  %v1787_v6 = vadd.f32 %v1786_v57, %v1785_v51 }
 0x128   :  { %v1788_v0 = vpop.f32.mrf.mxu1  ;;  %v1337_v5 = vadd.f32 %v1765_v63, %v1296_v2 }
 0x129   :  { %v1767_v1 = vpop.f32.mrf.mxu0 }
 0x12a   :  { %v1768_v7 = vadd.f32 %v1767_v1, %v1766_v58  ;;  %v1789_v8 = vpop.f32.mrf.mxu1  ;;  %v1378_v13 = vadd.f32 %v1787_v6, %v1337_v5 }
 0x12b   :  { %v1790_v18 = vadd.f32 %v1789_v8, %v1788_v0 }
 0x12c   :  { %v1340_v14 = vadd.f32 %v1768_v7, %v1299_v10 }
 0x12e   :  { %v1381_v24 = vadd.f32 %v1790_v18, %v1340_v14 }
 0x143   :  { %v1807_v9 = vpop.f32.mrf.mxu0 }
 0x145   :  { %v1829_v11 = vpop.f32.mrf.mxu1  ;;  %v1808_v12 = vpop.f32.mrf.mxu0 }
 0x146   :  { %v1809_v15 = vadd.f32 %v1808_v12, %v1807_v9 }
 0x147   :  { %v1830_v16 = vpop.f32.mrf.mxu1  ;;  %v1810_v17 = vpop.f32.mrf.mxu0 }
 0x148   :  { %v1419_v19 = vadd.f32 %v1809_v15, %v1378_v13  ;;  %v1831_v20 = vadd.f32 %v1830_v16, %v1829_v11 }
 0x149   :  { %v1832_v21 = vpop.f32.mrf.mxu1  ;;  %v1811_v23 = vpop.f32.mrf.mxu0 }
 0x14a   :  { %v1460_v25 = vadd.f32 %v1831_v20, %v1419_v19  ;;  %v1812_v26 = vadd.f32 %v1811_v23, %v1810_v17 }
 0x14b   :  { %v1833_v27 = vpop.f32.mrf.mxu1 }
 0x14c   :  { %v1492_v28 = vadd.f32 %v1658_v22, %v1460_v25  ;;  %v1422_v29 = vadd.f32 %v1812_v26, %v1381_v24  ;;  %v1834_v30 = vadd.f32 %v1833_v27, %v1832_v21  ;;  %v1473_v32 = vmul.f32 %v1460_v25, %v1460_v25 }
 0x14e   :  { %1494 = vst [vmem:[%s2459_s3] sm:$0xff] %v1492_v28  ;;  %v1463_v31 = vadd.f32 %v1834_v30, %v1422_v29 }
 0x150   :  { %v1466_v33 = vadd.f32 %v1463_v31, %v1460_v25  ;;  %v1474_v34 = vmul.f32 %v1463_v31, %v1463_v31  ;;  %v1493_v35 = vadd.f32 %v1658_v22, %v1463_v31 }
 0x152   :  { %v1467_v36 = vrot.slane %v1466_v33, 4  ;;  %v1475_v37 = vadd.f32 %v1474_v34, %v1473_v32  ;;  %1495 = vst [vmem:[%s2459_s3 + $0x8] sm:$0xff] %v1493_v35 }
 0x154   :  { %v1468_v38 = vadd.f32 %v1467_v36, %v1466_v33  ;;  %v1476_v39 = vrot.slane %v1475_v37, 4 }
 0x156   :  { %v1469_v40 = vrot.slane %v1468_v38, 2  ;;  %v1477_v41 = vadd.f32 %v1476_v39, %v1475_v37 }
 0x158   :  { %v1470_v42 = vadd.f32 %v1469_v40, %v1468_v38  ;;  %v1478_v43 = vrot.slane %v1477_v41, 2 }
 0x15a   :  { %v1471_v44 = vrot.slane %v1470_v42, 1  ;;  %v1479_v45 = vadd.f32 %v1478_v43, %v1477_v41 }
 0x15c   :  { %v1480_v46 = vrot.slane %v1479_v45, 1  ;;  %v1472_v47 = vadd.f32 %v1471_v44, %v1470_v42 }
 0x15e   :  { %v1481_v48 = vadd.f32 %v1480_v46, %v1479_v45 }
 0x160   :  { %v1483_v49 = vsel %vm1482_vm0, %v1472_v47, %v1481_v48 }
 0x161   :  { %1484 = vst [vmem:[#allocation2] sm:$0x3] %v1483_v49 }
 0x162   :  { %1975 = shalt.err (!%p1972_p4)
}
 0x163   :  { %1507 = dma.vmem_to_hbm [thread:$0]  %s1505_s21, 32, %s2460_s4, [#allocation3]  }
 0x164   :  { %1984 = dma.done.wait [#allocation3], 32  }
 0x165   :  { %1985 = vsyncadd [#allocation3], 4294967264 }
 0x166   :  { %1513 = vsyncpa [#allocation3], 1 }

</bundles_post_ra>
